<compile_context>
chip_gen: v7x
topology: tpu7x:2x2x1
jax: 0.10.0
libtpu: 0.0.40
codegen_flags: <defaults>
</compile_context>

<pallas_src>
import functools
import math

import jax
import jax.numpy as jnp
from jax.experimental import pallas as pl
from jax.experimental.pallas import tpu as pltpu

VMEM_SPEC = pl.BlockSpec(memory_space=pltpu.MemorySpace.VMEM)
C1 = math.tanh(1.0)  # value of the "ones" coordinate after the module's tanh


def _round_up(x, m):
    return ((x + m - 1) // m) * m


# ---------------------------------------------------------------------------
# Kernel 1: one bidirectional LSTM layer, both directions in one time loop.
#   x_ref    : (C, S, Dc)  input chunks, normal time order
#   xr_ref   : (C, S, Dc)  input chunks, reversed time order
#   wf_ref   : (C, Dc, 8H) fwd input weights placed in fwd gate columns
#   wb_ref   : (C, Dc, 8H) bwd input weights placed in bwd gate columns
#   wrec_ref : (2H, 8H)    block-structured recurrent weights (fwd rows -> fwd
#                          cols, bwd rows -> bwd cols)
#   b_ref    : (1, 8H)     b_ih + b_hh for both directions
#   y_ref    : (2, S, H)   outputs, normal order (chunk 0 = fwd, 1 = bwd)
#   yr_ref   : (2, S, H)   outputs, reversed order (next layer's xr chunks)
#   xw_ref   : (S, 8H)     VMEM scratch for the hoisted input projection;
#                          row t holds fwd gates of x[t] and bwd gates of
#                          x[S-1-t] -> one row load per step.
# Gate column packing: [i_f, i_b, f_f, f_b, o_f, o_b, g_f, g_b], each H wide.
# ---------------------------------------------------------------------------
def _bilstm_kernel(x_ref, xr_ref, wf_ref, wb_ref, wrec_ref, b_ref,
                   y_ref, yr_ref, xw_ref, *, seq, hidden):
    H = hidden
    C = x_ref.shape[0]

    # Hoisted input projection for BOTH directions (off the critical path).
    acc = (jnp.dot(x_ref[0], wf_ref[0], preferred_element_type=jnp.float32)
           + jnp.dot(xr_ref[0], wb_ref[0], preferred_element_type=jnp.float32))
    for c in range(1, C):
        acc = acc + (
            jnp.dot(x_ref[c], wf_ref[c], preferred_element_type=jnp.float32)
            + jnp.dot(xr_ref[c], wb_ref[c], preferred_element_type=jnp.float32))
    xw_ref[...] = acc + b_ref[...]                      # (S, 8H)

    wrec = wrec_ref[...]                                # (2H, 8H)

    def step(t, carry):
        h, c = carry                                    # (1, 2H) = [fwd | bwd]
        s1t = seq - 1 - t
        gates = xw_ref[pl.ds(t, 1), :] + jnp.dot(
            h, wrec, preferred_element_type=jnp.float32)        # (1, 8H)
        sig = jax.nn.sigmoid(gates[:, :6 * H])          # contiguous i,f,o slab
        i_g = sig[:, :2 * H]
        f_g = sig[:, 2 * H:4 * H]
        o_g = sig[:, 4 * H:6 * H]
        g_g = jnp.tanh(gates[:, 6 * H:])                # contiguous g slab
        c_new = f_g * c + i_g * g_g
        h_new = o_g * jnp.tanh(c_new)
        # h_new = [fwd hidden at time t | bwd hidden at time S-1-t]
        y_ref[0, pl.ds(t, 1), :] = h_new[:, :H]
        y_ref[1, pl.ds(s1t, 1), :] = h_new[:, H:]
        yr_ref[0, pl.ds(s1t, 1), :] = h_new[:, :H]
        yr_ref[1, pl.ds(t, 1), :] = h_new[:, H:]
        return h_new, c_new

    # Manual unroll: several independent steps per fori iteration give the
    # scheduler room to hide row loads / stores / EUP under the MXU latency.
    unroll = 1
    for f in (8, 4, 2):
        if seq % f == 0:
            unroll = f
            break

    def block(k, carry):
        for u in range(unroll):
            carry = step(k * unroll + u, carry)
        return carry

    h0 = jnp.zeros((1, 2 * H), jnp.float32)
    c0 = jnp.zeros((1, 2 * H), jnp.float32)
    jax.lax.fori_loop(0, seq // unroll, block, (h0, c0))


def _reorder_gates(w, H):
    """PyTorch gate-row order (i,f,g,o) -> columns (i,f,o,g): (4H,K) -> (K,4H)."""
    return jnp.concatenate(
        [w[0:H], w[H:2 * H], w[3 * H:4 * H], w[2 * H:3 * H]], axis=0).T


def _interleave_dirs(pf, pb, H):
    """(K,4H) fwd + (K,4H) bwd (gate-major i,f,o,g) -> (K,8H) with per-gate
    [fwd | bwd] column blocks: [i_f,i_b,f_f,f_b,o_f,o_b,g_f,g_b]."""
    blocks = []
    for g in range(4):
        blocks.append(pf[:, g * H:(g + 1) * H])
        blocks.append(pb[:, g * H:(g + 1) * H])
    return jnp.concatenate(blocks, axis=1)


def _pack_bilstm(lp, H, C, Dc):
    f, b = lp["fwd"], lp["bwd"]
    zc = jnp.zeros((Dc, 4 * H), jnp.float32)
    zh = jnp.zeros((H, 4 * H), jnp.float32)
    wf_chunks, wb_chunks = [], []
    for c in range(C):
        sl = slice(c * Dc, (c + 1) * Dc)
        wf_chunks.append(
            _interleave_dirs(_reorder_gates(f["wih"][:, sl], H), zc, H))
        wb_chunks.append(
            _interleave_dirs(zc, _reorder_gates(b["wih"][:, sl], H), H))
    wf = jnp.stack(wf_chunks)                                  # (C, Dc, 8H)
    wb = jnp.stack(wb_chunks)                                  # (C, Dc, 8H)
    wrec = jnp.concatenate(
        [_interleave_dirs(_reorder_gates(f["whh"], H), zh, H),
         _interleave_dirs(zh, _reorder_gates(b["whh"], H), H)], axis=0)  # (2H,8H)
    bias = _interleave_dirs(
        _reorder_gates((f["b_ih"] + f["b_hh"])[:, None], H),
        _reorder_gates((b["b_ih"] + b["b_hh"])[:, None], H), H)          # (1,8H)
    return wf, wb, wrec, bias


def bilstm_layer(x, x_rev, lp, H):
    """x, x_rev: (C, S, Dc) chunks in normal / reversed time order.
    Returns y, y_rev: (2, S, H) each (chunk 0 = fwd, chunk 1 = bwd)."""
    C, S, Dc = x.shape
    wf, wb, wrec, bias = _pack_bilstm(lp, H, C, Dc)
    return pl.pallas_call(
        functools.partial(_bilstm_kernel, seq=S, hidden=H),
        out_shape=(jax.ShapeDtypeStruct((2, S, H), jnp.float32),
                   jax.ShapeDtypeStruct((2, S, H), jnp.float32)),
        in_specs=[VMEM_SPEC] * 6,
        out_specs=(VMEM_SPEC, VMEM_SPEC),
        scratch_shapes=[pltpu.VMEM((S, 8 * H), jnp.float32)],
    )(x, x_rev, wf, wb, wrec, bias)


# ---------------------------------------------------------------------------
# Kernel 2: fused projections + biaffine precompute, gridded over row tiles.
#   scores[x,y] = [tanh(h_x), C1] A [tanh(m_y), C1]^T  is folded into
#   TH @ Z^T with TH = [tanh(h), 1, 0..], Z = tanh(m) @ A_aug + z_bias, where
#   A_aug carries A00^T and (scaled) a_row, z_bias carries a_col / corner.
# ---------------------------------------------------------------------------
def _proj_kernel(x_ref, w_ref, b_ref, a_ref, zb_ref, th1_ref,
                 th_ref, z_ref, *, mp):
    hm = (jnp.dot(x_ref[0], w_ref[0], preferred_element_type=jnp.float32)
          + jnp.dot(x_ref[1], w_ref[1], preferred_element_type=jnp.float32)
          + b_ref[...])
    act = jnp.tanh(hm)                                   # (rt, 2*MP)
    th_ref[...] = act[:, :mp] + th1_ref[...]             # pad col M -> 1.0
    z_ref[...] = (jnp.dot(act[:, mp:], a_ref[...],
                          preferred_element_type=jnp.float32) + zb_ref[...])


# ---------------------------------------------------------------------------
# Kernel 3: gridded biaffine scores: lane-dense (t, t) tiles, K = MP = 128.
# ---------------------------------------------------------------------------
def _scores_kernel(th_ref, z_ref, o_ref):
    o_ref[...] = jax.lax.dot_general(
        th_ref[...], z_ref[...], (((1,), (1,)), ((), ())),
        preferred_element_type=jnp.float32)


def scoring(y, Wh, bh, Wm, bm, A):
    """y: (2, S, H) LSTM output chunks -> (S, S) biaffine scores."""
    _, S, H = y.shape
    M = Wh.shape[0]
    MP = _round_up(M + 1, 128)          # lane-dense feature width (ones col at M)
    SP = _round_up(S, 128)              # padded sequence length

    # Fused, zero-padded projection weights: one (2H, 2*MP) matmul per tile.
    w_hm = jnp.zeros((2, H, 2 * MP), jnp.float32)
    w_hm = w_hm.at[:, :, :M].set(Wh.T.reshape(2, H, M))
    w_hm = w_hm.at[:, :, MP:MP + M].set(Wm.T.reshape(2, H, M))
    b_hm = jnp.zeros((1, 2 * MP), jnp.float32)
    b_hm = b_hm.at[0, :M].set(bh).at[0, MP:MP + M].set(bm)

    # Biaffine folded into an augmented matrix + bias row (C1 = tanh(1)).
    A2 = A[0]
    a_aug = jnp.zeros((MP, MP), jnp.float32)
    a_aug = a_aug.at[:M, :M].set(A2[:M, :M].T)
    a_aug = a_aug.at[:M, M].set(C1 * A2[M, :M])
    z_bias = jnp.zeros((1, MP), jnp.float32)
    z_bias = z_bias.at[0, :M].set(C1 * A2[:M, M]).at[0, M].set(C1 * C1 * A2[M, M])
    th_one = jnp.zeros((1, MP), jnp.float32).at[0, M].set(1.0)

    y_pad = jnp.zeros((2, SP, H), jnp.float32).at[:, :S, :].set(y)

    # Largest lane-dense tile dividing SP (512 >> 128 per the roofline data).
    t = 512 if SP % 512 == 0 else (256 if SP % 256 == 0 else 128)

    th, z = pl.pallas_call(
        functools.partial(_proj_kernel, mp=MP),
        out_shape=(jax.ShapeDtypeStruct((SP, MP), jnp.float32),
                   jax.ShapeDtypeStruct((SP, MP), jnp.float32)),
        grid=(SP // t,),
        in_specs=[pl.BlockSpec((2, t, H), lambda i: (0, i, 0)),
                  pl.BlockSpec((2, H, 2 * MP), lambda i: (0, 0, 0)),
                  pl.BlockSpec((1, 2 * MP), lambda i: (0, 0)),
                  pl.BlockSpec((MP, MP), lambda i: (0, 0)),
                  pl.BlockSpec((1, MP), lambda i: (0, 0)),
                  pl.BlockSpec((1, MP), lambda i: (0, 0))],
        out_specs=(pl.BlockSpec((t, MP), lambda i: (i, 0)),
                   pl.BlockSpec((t, MP), lambda i: (i, 0))),
        compiler_params=pltpu.CompilerParams(
            dimension_semantics=("parallel",)),
    )(y_pad, w_hm, b_hm, a_aug, z_bias, th_one)

    scores = pl.pallas_call(
        _scores_kernel,
        out_shape=jax.ShapeDtypeStruct((SP, SP), jnp.float32),
        grid=(SP // t, SP // t),
        in_specs=[pl.BlockSpec((t, MP), lambda i, j: (i, 0)),
                  pl.BlockSpec((t, MP), lambda i, j: (j, 0))],
        out_specs=pl.BlockSpec((t, t), lambda i, j: (i, j)),
        compiler_params=pltpu.CompilerParams(
            dimension_semantics=("parallel", "parallel")),
    )(th, z)
    return scores[:S, :S]


# ---------------------------------------------------------------------------
# Full forward (glue + Pallas kernels)
# ---------------------------------------------------------------------------
def forward(params, sentence):
    word_idx, pos_idx, _headers, _sentence_len = sentence
    S = word_idx.shape[1]
    H = params["hidden_dim"]

    # TODO(synk): embedding gather stays in glue JAX (could become a
    # scalar-prefetch DMA gather kernel).
    we = params["word_emb"][word_idx[0]]                 # (S, Dw)
    pe = params["pos_emb"][pos_idx[0]]                   # (S, Dp)
    emb = jnp.concatenate([we, pe], axis=-1)             # (S, D0)
    x = emb[None]                                        # (1, S, D0) chunk form
    x_rev = jnp.flip(emb, axis=0)[None]                  # (1, S, D0) reversed

    for layer in range(params["num_layers"]):
        x, x_rev = bilstm_layer(x, x_rev, params[f"lstm_l{layer}"], H)

    scores = scoring(x, params["mlp_h_W"], params["mlp_h_b"],
                     params["mlp_m_W"], params["mlp_m_b"],
                     params["attention"])
    return scores.reshape(1, S, S)


# ---------------------------------------------------------------------------
# Pure-JAX reference (mirrors the PyTorch module exactly; for checking only)
# ---------------------------------------------------------------------------
def _ref_lstm_dir(x, wih, whh, b_ih, b_hh):
    H = whh.shape[1]

    def step(carry, xt):
        h, c = carry
        gates = xt @ wih.T + h @ whh.T + b_ih + b_hh
        i, f, g, o = jnp.split(gates, 4)
        i, f, o = jax.nn.sigmoid(i), jax.nn.sigmoid(f), jax.nn.sigmoid(o)
        g = jnp.tanh(g)
        c = f * c + i * g
        h = o * jnp.tanh(c)
        return (h, c), h

    (_, _), hs = jax.lax.scan(step, (jnp.zeros(H), jnp.zeros(H)), x)
    return hs


def ref_forward(params, sentence):
    word_idx, pos_idx, _headers, _sentence_len = sentence
    S = word_idx.shape[1]
    we = params["word_emb"][word_idx[0]]
    pe = params["pos_emb"][pos_idx[0]]
    x = jnp.concatenate([we, pe], axis=-1)
    for layer in range(params["num_layers"]):
        lp = params[f"lstm_l{layer}"]
        f = lp["fwd"]
        b = lp["bwd"]
        fwd = _ref_lstm_dir(x, f["wih"], f["whh"], f["b_ih"], f["b_hh"])
        bwd = jnp.flip(_ref_lstm_dir(jnp.flip(x, 0), b["wih"], b["whh"],
                                     b["b_ih"], b["b_hh"]), 0)
        x = jnp.concatenate([fwd, bwd], axis=-1)
    h = x @ params["mlp_h_W"].T + params["mlp_h_b"]
    m = x @ params["mlp_m_W"].T + params["mlp_m_b"]
    hb = jnp.tanh(jnp.concatenate([h, jnp.ones((S, 1))], -1))   # tanh AFTER aug
    mb = jnp.tanh(jnp.concatenate([m, jnp.ones((S, 1))], -1))
    scores = jnp.einsum("xi,ij,yj->xy", hb, params["attention"][0], mb)
    return scores.reshape(1, S, S)


# ---------------------------------------------------------------------------
# Deterministic parameter construction (PyTorch-native layouts)
# ---------------------------------------------------------------------------
def make_params(key, vocab, word_emb_dim, pos_vocab, pos_emb_dim,
                hidden_dim, mlp_dim, lstm_layers):
    ks = iter(jax.random.split(key, 128))
    nrm = lambda shape, s=0.1: (s * jax.random.normal(next(ks), shape)).astype(jnp.float32)

    params = {
        "num_layers": lstm_layers,
        "hidden_dim": hidden_dim,
        "word_emb": nrm((vocab, word_emb_dim), 1.0),
        "pos_emb": nrm((pos_vocab, pos_emb_dim), 1.0),
        "mlp_h_W": nrm((mlp_dim, 2 * hidden_dim)),
        "mlp_h_b": nrm((mlp_dim,)),
        "mlp_m_W": nrm((mlp_dim, 2 * hidden_dim)),
        "mlp_m_b": nrm((mlp_dim,)),
        # nn.init.zeros_ in the original __init__; small random values used so
        # the biaffine path is actually exercised by the kernels.
        "attention": nrm((1, mlp_dim + 1, mlp_dim + 1)),
    }
    lstm_in = word_emb_dim + pos_emb_dim
    for layer in range(lstm_layers):
        din = lstm_in if layer == 0 else 2 * hidden_dim
        layer_p = {}
        for direction in ("fwd", "bwd"):
            layer_p[direction] = {
                "wih": nrm((4 * hidden_dim, din)),
                "whh": nrm((4 * hidden_dim, hidden_dim)),
                "b_ih": nrm((4 * hidden_dim,)),
                "b_hh": nrm((4 * hidden_dim,)),
            }
        params[f"lstm_l{layer}"] = layer_p
    return params


# ---------------------------------------------------------------------------
if __name__ == "__main__":
    # small, module-consistent shapes (module defaults scaled down)
    SEQ = 8
    VOCAB, WORD_EMB = 50, 32
    POS_VOCAB, POS_EMB = 12, 8
    HIDDEN, MLP_DIM, LAYERS = 32, 32, 2

    key = jax.random.PRNGKey(0)
    kp, kw, kpos = jax.random.split(key, 3)
    params = make_params(kp, VOCAB, WORD_EMB, POS_VOCAB, POS_EMB,
                         HIDDEN, MLP_DIM, LAYERS)

    word_idx = jax.random.randint(kw, (1, SEQ), 0, VOCAB, dtype=jnp.int32)
    pos_idx = jax.random.randint(kpos, (1, SEQ), 0, POS_VOCAB, dtype=jnp.int32)
    headers = jnp.zeros((1, SEQ), jnp.int32)        # unused by forward
    sentence_len = jnp.array(SEQ, jnp.int32)        # unused by forward
    sentence = (word_idx, pos_idx, headers, sentence_len)

    scores = jax.block_until_ready(forward(params, sentence))
    ref = jax.block_until_ready(ref_forward(params, sentence))

    assert scores.shape == (1, SEQ, SEQ)
    max_err = float(jnp.max(jnp.abs(scores - ref)))
    assert max_err < 5e-3, f"mismatch vs reference: {max_err}"

    print("KERNEL_OK")
</pallas_src>

<mosaic_0001>
module attributes {stable_mosaic.version = 11 : i64} {
  func.func @_bilstm_kernel(%arg0: memref<1x8x40xf32, #tpu.memory_space<vmem>>, %arg1: memref<1x8x40xf32, #tpu.memory_space<vmem>>, %arg2: memref<1x40x256xf32, #tpu.memory_space<vmem>>, %arg3: memref<1x40x256xf32, #tpu.memory_space<vmem>>, %arg4: memref<64x256xf32, #tpu.memory_space<vmem>>, %arg5: memref<1x256xf32, #tpu.memory_space<vmem>>, %arg6: memref<2x8x32xf32, #tpu.memory_space<vmem>>, %arg7: memref<2x8x32xf32, #tpu.memory_space<vmem>>, %arg8: memref<8x256xf32, #tpu.memory_space<vmem>>) attributes {dimension_semantics = [], scalar_prefetch = 0 : i64, scratch_operands = 1 : i64, tpu.core_type = #tpu.core_type<tc>} {
    %c0 = arith.constant 0 : index
    %c0_0 = arith.constant 0 : index
    %c0_1 = arith.constant 0 : index
    %0 = vector.load %arg0[%c0, %c0_0, %c0_1] : memref<1x8x40xf32, #tpu.memory_space<vmem>>, vector<1x8x40xf32>
    %1 = vector.shape_cast %0 : vector<1x8x40xf32> to vector<8x40xf32>
    %c0_2 = arith.constant 0 : index
    %c0_3 = arith.constant 0 : index
    %c0_4 = arith.constant 0 : index
    %2 = vector.load %arg2[%c0_2, %c0_3, %c0_4] : memref<1x40x256xf32, #tpu.memory_space<vmem>>, vector<1x40x256xf32>
    %3 = vector.shape_cast %2 : vector<1x40x256xf32> to vector<40x256xf32>
    %cst = arith.constant dense<0.000000e+00> : vector<8x256xf32>
    %4 = tpu.matmul %1, %3, %cst {dimension_numbers = #tpu.dot_dimension_numbers<[1], [0], [0], [1], [0, 0, 1, 1], [], []>} : vector<8x40xf32>, vector<40x256xf32>, vector<8x256xf32> -> vector<8x256xf32>
    %c0_5 = arith.constant 0 : index
    %c0_6 = arith.constant 0 : index
    %c0_7 = arith.constant 0 : index
    %5 = vector.load %arg1[%c0_5, %c0_6, %c0_7] : memref<1x8x40xf32, #tpu.memory_space<vmem>>, vector<1x8x40xf32>
    %6 = vector.shape_cast %5 : vector<1x8x40xf32> to vector<8x40xf32>
    %c0_8 = arith.constant 0 : index
    %c0_9 = arith.constant 0 : index
    %c0_10 = arith.constant 0 : index
    %7 = vector.load %arg3[%c0_8, %c0_9, %c0_10] : memref<1x40x256xf32, #tpu.memory_space<vmem>>, vector<1x40x256xf32>
    %8 = vector.shape_cast %7 : vector<1x40x256xf32> to vector<40x256xf32>
    %cst_11 = arith.constant dense<0.000000e+00> : vector<8x256xf32>
    %9 = tpu.matmul %6, %8, %cst_11 {dimension_numbers = #tpu.dot_dimension_numbers<[1], [0], [0], [1], [0, 0, 1, 1], [], []>} : vector<8x40xf32>, vector<40x256xf32>, vector<8x256xf32> -> vector<8x256xf32>
    %10 = arith.addf %4, %9 : vector<8x256xf32>
    %c0_12 = arith.constant 0 : index
    %c0_13 = arith.constant 0 : index
    %11 = vector.load %arg5[%c0_12, %c0_13] : memref<1x256xf32, #tpu.memory_space<vmem>>, vector<1x256xf32>
    %12 = vector.broadcast %11 : vector<1x256xf32> to vector<8x256xf32>
    %13 = arith.addf %10, %12 : vector<8x256xf32>
    %c0_14 = arith.constant 0 : index
    %c0_15 = arith.constant 0 : index
    %14 = vector.load %arg8[%c0_14, %c0_15] : memref<8x256xf32, #tpu.memory_space<vmem>>, vector<8x256xf32>
    tpu.vector_store %arg8[%c0_14, %c0_15], %13 {strides = array<i32>} : memref<8x256xf32, #tpu.memory_space<vmem>>, vector<8x256xf32>,
    %c0_16 = arith.constant 0 : index
    %c0_17 = arith.constant 0 : index
    %15 = vector.load %arg4[%c0_16, %c0_17] : memref<64x256xf32, #tpu.memory_space<vmem>>, vector<64x256xf32>
    %cst_18 = arith.constant 0.000000e+00 : f32
    %16 = vector.broadcast %cst_18 : f32 to vector<1x64xf32>
    %cst_19 = arith.constant 0.000000e+00 : f32
    %17 = vector.broadcast %cst_19 : f32 to vector<1x64xf32>
    %c0_i32 = arith.constant 0 : i32
    %c8_i32 = arith.constant 8 : i32
    %18 = arith.muli %c0_i32, %c8_i32 : i32
    %c0_i32_20 = arith.constant 0 : i32
    %19 = arith.addi %18, %c0_i32_20 : i32
    %c7_i32 = arith.constant 7 : i32
    %20 = arith.subi %c7_i32, %19 : i32
    %21 = arith.index_cast %19 : i32 to index
    %c0_21 = arith.constant 0 : index
    %22 = vector.load %arg8[%21, %c0_21] : memref<8x256xf32, #tpu.memory_space<vmem>>, vector<1x256xf32>
    %cst_22 = arith.constant dense<0.000000e+00> : vector<1x256xf32>
    %23 = tpu.matmul %16, %15, %cst_22 {dimension_numbers = #tpu.dot_dimension_numbers<[1], [0], [0], [1], [0, 0, 1, 1], [], []>} : vector<1x64xf32>, vector<64x256xf32>, vector<1x256xf32> -> vector<1x256xf32>
    %24 = arith.addf %22, %23 : vector<1x256xf32>
    %25 = vector.extract_strided_slice %24 {offsets = [0, 0], sizes = [1, 192], strides = [1, 1]} : vector<1x256xf32> to vector<1x192xf32>
    %26 = arith.negf %25 : vector<1x192xf32>
    %27 = math.exp %26 : vector<1x192xf32>
    %cst_23 = arith.constant 1.000000e+00 : f32
    %28 = vector.broadcast %cst_23 : f32 to vector<1x192xf32>
    %29 = arith.addf %28, %27 : vector<1x192xf32>
    %30 = arith.divf %28, %29 : vector<1x192xf32>
    %31 = vector.extract_strided_slice %30 {offsets = [0, 0], sizes = [1, 64], strides = [1, 1]} : vector<1x192xf32> to vector<1x64xf32>
    %32 = vector.extract_strided_slice %30 {offsets = [0, 64], sizes = [1, 64], strides = [1, 1]} : vector<1x192xf32> to vector<1x64xf32>
    %33 = vector.extract_strided_slice %30 {offsets = [0, 128], sizes = [1, 64], strides = [1, 1]} : vector<1x192xf32> to vector<1x64xf32>
    %34 = vector.extract_strided_slice %24 {offsets = [0, 192], sizes = [1, 64], strides = [1, 1]} : vector<1x256xf32> to vector<1x64xf32>
    %35 = math.tanh %34 : vector<1x64xf32>
    %36 = arith.mulf %32, %17 : vector<1x64xf32>
    %37 = arith.mulf %31, %35 : vector<1x64xf32>
    %38 = arith.addf %36, %37 : vector<1x64xf32>
    %39 = math.tanh %38 : vector<1x64xf32>
    %40 = arith.mulf %33, %39 : vector<1x64xf32>
    %41 = vector.extract_strided_slice %40 {offsets = [0, 0], sizes = [1, 32], strides = [1, 1]} : vector<1x64xf32> to vector<1x32xf32>
    %c0_24 = arith.constant 0 : index
    %42 = arith.index_cast %19 : i32 to index
    %c0_25 = arith.constant 0 : index
    %43 = vector.load %arg6[%c0_24, %42, %c0_25] : memref<2x8x32xf32, #tpu.memory_space<vmem>>, vector<1x1x32xf32>
    %44 = vector.shape_cast %43 : vector<1x1x32xf32> to vector<1x32xf32>
    %45 = vector.shape_cast %41 : vector<1x32xf32> to vector<1x1x32xf32>
    tpu.vector_store %arg6[%c0_24, %42, %c0_25], %45 {strides = array<i32>} : memref<2x8x32xf32, #tpu.memory_space<vmem>>, vector<1x1x32xf32>,
    %46 = vector.extract_strided_slice %40 {offsets = [0, 32], sizes = [1, 32], strides = [1, 1]} : vector<1x64xf32> to vector<1x32xf32>
    %c1 = arith.constant 1 : index
    %47 = arith.index_cast %20 : i32 to index
    %c0_26 = arith.constant 0 : index
    %48 = vector.load %arg6[%c1, %47, %c0_26] : memref<2x8x32xf32, #tpu.memory_space<vmem>>, vector<1x1x32xf32>
    %49 = vector.shape_cast %48 : vector<1x1x32xf32> to vector<1x32xf32>
    %50 = vector.shape_cast %46 : vector<1x32xf32> to vector<1x1x32xf32>
    tpu.vector_store %arg6[%c1, %47, %c0_26], %50 {strides = array<i32>} : memref<2x8x32xf32, #tpu.memory_space<vmem>>, vector<1x1x32xf32>,
    %51 = vector.extract_strided_slice %40 {offsets = [0, 0], sizes = [1, 32], strides = [1, 1]} : vector<1x64xf32> to vector<1x32xf32>
    %c0_27 = arith.constant 0 : index
    %52 = arith.index_cast %20 : i32 to index
    %c0_28 = arith.constant 0 : index
    %53 = vector.load %arg7[%c0_27, %52, %c0_28] : memref<2x8x32xf32, #tpu.memory_space<vmem>>, vector<1x1x32xf32>
    %54 = vector.shape_cast %53 : vector<1x1x32xf32> to vector<1x32xf32>
    %55 = vector.shape_cast %51 : vector<1x32xf32> to vector<1x1x32xf32>
    tpu.vector_store %arg7[%c0_27, %52, %c0_28], %55 {strides = array<i32>} : memref<2x8x32xf32, #tpu.memory_space<vmem>>, vector<1x1x32xf32>,
    %56 = vector.extract_strided_slice %40 {offsets = [0, 32], sizes = [1, 32], strides = [1, 1]} : vector<1x64xf32> to vector<1x32xf32>
    %c1_29 = arith.constant 1 : index
    %57 = arith.index_cast %19 : i32 to index
    %c0_30 = arith.constant 0 : index
    %58 = vector.load %arg7[%c1_29, %57, %c0_30] : memref<2x8x32xf32, #tpu.memory_space<vmem>>, vector<1x1x32xf32>
    %59 = vector.shape_cast %58 : vector<1x1x32xf32> to vector<1x32xf32>
    %60 = vector.shape_cast %56 : vector<1x32xf32> to vector<1x1x32xf32>
    tpu.vector_store %arg7[%c1_29, %57, %c0_30], %60 {strides = array<i32>} : memref<2x8x32xf32, #tpu.memory_space<vmem>>, vector<1x1x32xf32>,
    %c8_i32_31 = arith.constant 8 : i32
    %61 = arith.muli %c0_i32, %c8_i32_31 : i32
    %c1_i32 = arith.constant 1 : i32
    %62 = arith.addi %61, %c1_i32 : i32
    %c7_i32_32 = arith.constant 7 : i32
    %63 = arith.subi %c7_i32_32, %62 : i32
    %64 = arith.index_cast %62 : i32 to index
    %c0_33 = arith.constant 0 : index
    %65 = vector.load %arg8[%64, %c0_33] : memref<8x256xf32, #tpu.memory_space<vmem>>, vector<1x256xf32>
    %cst_34 = arith.constant dense<0.000000e+00> : vector<1x256xf32>
    %66 = tpu.matmul %40, %15, %cst_34 {dimension_numbers = #tpu.dot_dimension_numbers<[1], [0], [0], [1], [0, 0, 1, 1], [], []>} : vector<1x64xf32>, vector<64x256xf32>, vector<1x256xf32> -> vector<1x256xf32>
    %67 = arith.addf %65, %66 : vector<1x256xf32>
    %68 = vector.extract_strided_slice %67 {offsets = [0, 0], sizes = [1, 192], strides = [1, 1]} : vector<1x256xf32> to vector<1x192xf32>
    %69 = arith.negf %68 : vector<1x192xf32>
    %70 = math.exp %69 : vector<1x192xf32>
    %cst_35 = arith.constant 1.000000e+00 : f32
    %71 = vector.broadcast %cst_35 : f32 to vector<1x192xf32>
    %72 = arith.addf %71, %70 : vector<1x192xf32>
    %73 = arith.divf %71, %72 : vector<1x192xf32>
    %74 = vector.extract_strided_slice %73 {offsets = [0, 0], sizes = [1, 64], strides = [1, 1]} : vector<1x192xf32> to vector<1x64xf32>
    %75 = vector.extract_strided_slice %73 {offsets = [0, 64], sizes = [1, 64], strides = [1, 1]} : vector<1x192xf32> to vector<1x64xf32>
    %76 = vector.extract_strided_slice %73 {offsets = [0, 128], sizes = [1, 64], strides = [1, 1]} : vector<1x192xf32> to vector<1x64xf32>
    %77 = vector.extract_strided_slice %67 {offsets = [0, 192], sizes = [1, 64], strides = [1, 1]} : vector<1x256xf32> to vector<1x64xf32>
    %78 = math.tanh %77 : vector<1x64xf32>
    %79 = arith.mulf %75, %38 : vector<1x64xf32>
    %80 = arith.mulf %74, %78 : vector<1x64xf32>
    %81 = arith.addf %79, %80 : vector<1x64xf32>
    %82 = math.tanh %81 : vector<1x64xf32>
    %83 = arith.mulf %76, %82 : vector<1x64xf32>
    %84 = vector.extract_strided_slice %83 {offsets = [0, 0], sizes = [1, 32], strides = [1, 1]} : vector<1x64xf32> to vector<1x32xf32>
    %c0_36 = arith.constant 0 : index
    %85 = arith.index_cast %62 : i32 to index
    %c0_37 = arith.constant 0 : index
    %86 = vector.load %arg6[%c0_36, %85, %c0_37] : memref<2x8x32xf32, #tpu.memory_space<vmem>>, vector<1x1x32xf32>
    %87 = vector.shape_cast %86 : vector<1x1x32xf32> to vector<1x32xf32>
    %88 = vector.shape_cast %84 : vector<1x32xf32> to vector<1x1x32xf32>
    tpu.vector_store %arg6[%c0_36, %85, %c0_37], %88 {strides = array<i32>} : memref<2x8x32xf32, #tpu.memory_space<vmem>>, vector<1x1x32xf32>,
    %89 = vector.extract_strided_slice %83 {offsets = [0, 32], sizes = [1, 32], strides = [1, 1]} : vector<1x64xf32> to vector<1x32xf32>
    %c1_38 = arith.constant 1 : index
    %90 = arith.index_cast %63 : i32 to index
    %c0_39 = arith.constant 0 : index
    %91 = vector.load %arg6[%c1_38, %90, %c0_39] : memref<2x8x32xf32, #tpu.memory_space<vmem>>, vector<1x1x32xf32>
    %92 = vector.shape_cast %91 : vector<1x1x32xf32> to vector<1x32xf32>
    %93 = vector.shape_cast %89 : vector<1x32xf32> to vector<1x1x32xf32>
    tpu.vector_store %arg6[%c1_38, %90, %c0_39], %93 {strides = array<i32>} : memref<2x8x32xf32, #tpu.memory_space<vmem>>, vector<1x1x32xf32>,
    %94 = vector.extract_strided_slice %83 {offsets = [0, 0], sizes = [1, 32], strides = [1, 1]} : vector<1x64xf32> to vector<1x32xf32>
    %c0_40 = arith.constant 0 : index
    %95 = arith.index_cast %63 : i32 to index
    %c0_41 = arith.constant 0 : index
    %96 = vector.load %arg7[%c0_40, %95, %c0_41] : memref<2x8x32xf32, #tpu.memory_space<vmem>>, vector<1x1x32xf32>
    %97 = vector.shape_cast %96 : vector<1x1x32xf32> to vector<1x32xf32>
    %98 = vector.shape_cast %94 : vector<1x32xf32> to vector<1x1x32xf32>
    tpu.vector_store %arg7[%c0_40, %95, %c0_41], %98 {strides = array<i32>} : memref<2x8x32xf32, #tpu.memory_space<vmem>>, vector<1x1x32xf32>,
    %99 = vector.extract_strided_slice %83 {offsets = [0, 32], sizes = [1, 32], strides = [1, 1]} : vector<1x64xf32> to vector<1x32xf32>
    %c1_42 = arith.constant 1 : index
    %100 = arith.index_cast %62 : i32 to index
    %c0_43 = arith.constant 0 : index
    %101 = vector.load %arg7[%c1_42, %100, %c0_43] : memref<2x8x32xf32, #tpu.memory_space<vmem>>, vector<1x1x32xf32>
    %102 = vector.shape_cast %101 : vector<1x1x32xf32> to vector<1x32xf32>
    %103 = vector.shape_cast %99 : vector<1x32xf32> to vector<1x1x32xf32>
    tpu.vector_store %arg7[%c1_42, %100, %c0_43], %103 {strides = array<i32>} : memref<2x8x32xf32, #tpu.memory_space<vmem>>, vector<1x1x32xf32>,
    %c8_i32_44 = arith.constant 8 : i32
    %104 = arith.muli %c0_i32, %c8_i32_44 : i32
    %c2_i32 = arith.constant 2 : i32
    %105 = arith.addi %104, %c2_i32 : i32
    %c7_i32_45 = arith.constant 7 : i32
    %106 = arith.subi %c7_i32_45, %105 : i32
    %107 = arith.index_cast %105 : i32 to index
    %c0_46 = arith.constant 0 : index
    %108 = vector.load %arg8[%107, %c0_46] : memref<8x256xf32, #tpu.memory_space<vmem>>, vector<1x256xf32>
    %cst_47 = arith.constant dense<0.000000e+00> : vector<1x256xf32>
    %109 = tpu.matmul %83, %15, %cst_47 {dimension_numbers = #tpu.dot_dimension_numbers<[1], [0], [0], [1], [0, 0, 1, 1], [], []>} : vector<1x64xf32>, vector<64x256xf32>, vector<1x256xf32> -> vector<1x256xf32>
    %110 = arith.addf %108, %109 : vector<1x256xf32>
    %111 = vector.extract_strided_slice %110 {offsets = [0, 0], sizes = [1, 192], strides = [1, 1]} : vector<1x256xf32> to vector<1x192xf32>
    %112 = arith.negf %111 : vector<1x192xf32>
    %113 = math.exp %112 : vector<1x192xf32>
    %cst_48 = arith.constant 1.000000e+00 : f32
    %114 = vector.broadcast %cst_48 : f32 to vector<1x192xf32>
    %115 = arith.addf %114, %113 : vector<1x192xf32>
    %116 = arith.divf %114, %115 : vector<1x192xf32>
    %117 = vector.extract_strided_slice %116 {offsets = [0, 0], sizes = [1, 64], strides = [1, 1]} : vector<1x192xf32> to vector<1x64xf32>
    %118 = vector.extract_strided_slice %116 {offsets = [0, 64], sizes = [1, 64], strides = [1, 1]} : vector<1x192xf32> to vector<1x64xf32>
    %119 = vector.extract_strided_slice %116 {offsets = [0, 128], sizes = [1, 64], strides = [1, 1]} : vector<1x192xf32> to vector<1x64xf32>
    %120 = vector.extract_strided_slice %110 {offsets = [0, 192], sizes = [1, 64], strides = [1, 1]} : vector<1x256xf32> to vector<1x64xf32>
    %121 = math.tanh %120 : vector<1x64xf32>
    %122 = arith.mulf %118, %81 : vector<1x64xf32>
    %123 = arith.mulf %117, %121 : vector<1x64xf32>
    %124 = arith.addf %122, %123 : vector<1x64xf32>
    %125 = math.tanh %124 : vector<1x64xf32>
    %126 = arith.mulf %119, %125 : vector<1x64xf32>
    %127 = vector.extract_strided_slice %126 {offsets = [0, 0], sizes = [1, 32], strides = [1, 1]} : vector<1x64xf32> to vector<1x32xf32>
    %c0_49 = arith.constant 0 : index
    %128 = arith.index_cast %105 : i32 to index
    %c0_50 = arith.constant 0 : index
    %129 = vector.load %arg6[%c0_49, %128, %c0_50] : memref<2x8x32xf32, #tpu.memory_space<vmem>>, vector<1x1x32xf32>
    %130 = vector.shape_cast %129 : vector<1x1x32xf32> to vector<1x32xf32>
    %131 = vector.shape_cast %127 : vector<1x32xf32> to vector<1x1x32xf32>
    tpu.vector_store %arg6[%c0_49, %128, %c0_50], %131 {strides = array<i32>} : memref<2x8x32xf32, #tpu.memory_space<vmem>>, vector<1x1x32xf32>,
    %132 = vector.extract_strided_slice %126 {offsets = [0, 32], sizes = [1, 32], strides = [1, 1]} : vector<1x64xf32> to vector<1x32xf32>
    %c1_51 = arith.constant 1 : index
    %133 = arith.index_cast %106 : i32 to index
    %c0_52 = arith.constant 0 : index
    %134 = vector.load %arg6[%c1_51, %133, %c0_52] : memref<2x8x32xf32, #tpu.memory_space<vmem>>, vector<1x1x32xf32>
    %135 = vector.shape_cast %134 : vector<1x1x32xf32> to vector<1x32xf32>
    %136 = vector.shape_cast %132 : vector<1x32xf32> to vector<1x1x32xf32>
    tpu.vector_store %arg6[%c1_51, %133, %c0_52], %136 {strides = array<i32>} : memref<2x8x32xf32, #tpu.memory_space<vmem>>, vector<1x1x32xf32>,
    %137 = vector.extract_strided_slice %126 {offsets = [0, 0], sizes = [1, 32], strides = [1, 1]} : vector<1x64xf32> to vector<1x32xf32>
    %c0_53 = arith.constant 0 : index
    %138 = arith.index_cast %106 : i32 to index
    %c0_54 = arith.constant 0 : index
    %139 = vector.load %arg7[%c0_53, %138, %c0_54] : memref<2x8x32xf32, #tpu.memory_space<vmem>>, vector<1x1x32xf32>
    %140 = vector.shape_cast %139 : vector<1x1x32xf32> to vector<1x32xf32>
    %141 = vector.shape_cast %137 : vector<1x32xf32> to vector<1x1x32xf32>
    tpu.vector_store %arg7[%c0_53, %138, %c0_54], %141 {strides = array<i32>} : memref<2x8x32xf32, #tpu.memory_space<vmem>>, vector<1x1x32xf32>,
    %142 = vector.extract_strided_slice %126 {offsets = [0, 32], sizes = [1, 32], strides = [1, 1]} : vector<1x64xf32> to vector<1x32xf32>
    %c1_55 = arith.constant 1 : index
    %143 = arith.index_cast %105 : i32 to index
    %c0_56 = arith.constant 0 : index
    %144 = vector.load %arg7[%c1_55, %143, %c0_56] : memref<2x8x32xf32, #tpu.memory_space<vmem>>, vector<1x1x32xf32>
    %145 = vector.shape_cast %144 : vector<1x1x32xf32> to vector<1x32xf32>
    %146 = vector.shape_cast %142 : vector<1x32xf32> to vector<1x1x32xf32>
    tpu.vector_store %arg7[%c1_55, %143, %c0_56], %146 {strides = array<i32>} : memref<2x8x32xf32, #tpu.memory_space<vmem>>, vector<1x1x32xf32>,
    %c8_i32_57 = arith.constant 8 : i32
    %147 = arith.muli %c0_i32, %c8_i32_57 : i32
    %c3_i32 = arith.constant 3 : i32
    %148 = arith.addi %147, %c3_i32 : i32
    %c7_i32_58 = arith.constant 7 : i32
    %149 = arith.subi %c7_i32_58, %148 : i32
    %150 = arith.index_cast %148 : i32 to index
    %c0_59 = arith.constant 0 : index
    %151 = vector.load %arg8[%150, %c0_59] : memref<8x256xf32, #tpu.memory_space<vmem>>, vector<1x256xf32>
    %cst_60 = arith.constant dense<0.000000e+00> : vector<1x256xf32>
    %152 = tpu.matmul %126, %15, %cst_60 {dimension_numbers = #tpu.dot_dimension_numbers<[1], [0], [0], [1], [0, 0, 1, 1], [], []>} : vector<1x64xf32>, vector<64x256xf32>, vector<1x256xf32> -> vector<1x256xf32>
    %153 = arith.addf %151, %152 : vector<1x256xf32>
    %154 = vector.extract_strided_slice %153 {offsets = [0, 0], sizes = [1, 192], strides = [1, 1]} : vector<1x256xf32> to vector<1x192xf32>
    %155 = arith.negf %154 : vector<1x192xf32>
    %156 = math.exp %155 : vector<1x192xf32>
    %cst_61 = arith.constant 1.000000e+00 : f32
    %157 = vector.broadcast %cst_61 : f32 to vector<1x192xf32>
    %158 = arith.addf %157, %156 : vector<1x192xf32>
    %159 = arith.divf %157, %158 : vector<1x192xf32>
    %160 = vector.extract_strided_slice %159 {offsets = [0, 0], sizes = [1, 64], strides = [1, 1]} : vector<1x192xf32> to vector<1x64xf32>
    %161 = vector.extract_strided_slice %159 {offsets = [0, 64], sizes = [1, 64], strides = [1, 1]} : vector<1x192xf32> to vector<1x64xf32>
    %162 = vector.extract_strided_slice %159 {offsets = [0, 128], sizes = [1, 64], strides = [1, 1]} : vector<1x192xf32> to vector<1x64xf32>
    %163 = vector.extract_strided_slice %153 {offsets = [0, 192], sizes = [1, 64], strides = [1, 1]} : vector<1x256xf32> to vector<1x64xf32>
    %164 = math.tanh %163 : vector<1x64xf32>
    %165 = arith.mulf %161, %124 : vector<1x64xf32>
    %166 = arith.mulf %160, %164 : vector<1x64xf32>
    %167 = arith.addf %165, %166 : vector<1x64xf32>
    %168 = math.tanh %167 : vector<1x64xf32>
    %169 = arith.mulf %162, %168 : vector<1x64xf32>
    %170 = vector.extract_strided_slice %169 {offsets = [0, 0], sizes = [1, 32], strides = [1, 1]} : vector<1x64xf32> to vector<1x32xf32>
    %c0_62 = arith.constant 0 : index
    %171 = arith.index_cast %148 : i32 to index
    %c0_63 = arith.constant 0 : index
    %172 = vector.load %arg6[%c0_62, %171, %c0_63] : memref<2x8x32xf32, #tpu.memory_space<vmem>>, vector<1x1x32xf32>
    %173 = vector.shape_cast %172 : vector<1x1x32xf32> to vector<1x32xf32>
    %174 = vector.shape_cast %170 : vector<1x32xf32> to vector<1x1x32xf32>
    tpu.vector_store %arg6[%c0_62, %171, %c0_63], %174 {strides = array<i32>} : memref<2x8x32xf32, #tpu.memory_space<vmem>>, vector<1x1x32xf32>,
    %175 = vector.extract_strided_slice %169 {offsets = [0, 32], sizes = [1, 32], strides = [1, 1]} : vector<1x64xf32> to vector<1x32xf32>
    %c1_64 = arith.constant 1 : index
    %176 = arith.index_cast %149 : i32 to index
    %c0_65 = arith.constant 0 : index
    %177 = vector.load %arg6[%c1_64, %176, %c0_65] : memref<2x8x32xf32, #tpu.memory_space<vmem>>, vector<1x1x32xf32>
    %178 = vector.shape_cast %177 : vector<1x1x32xf32> to vector<1x32xf32>
    %179 = vector.shape_cast %175 : vector<1x32xf32> to vector<1x1x32xf32>
    tpu.vector_store %arg6[%c1_64, %176, %c0_65], %179 {strides = array<i32>} : memref<2x8x32xf32, #tpu.memory_space<vmem>>, vector<1x1x32xf32>,
    %180 = vector.extract_strided_slice %169 {offsets = [0, 0], sizes = [1, 32], strides = [1, 1]} : vector<1x64xf32> to vector<1x32xf32>
    %c0_66 = arith.constant 0 : index
    %181 = arith.index_cast %149 : i32 to index
    %c0_67 = arith.constant 0 : index
    %182 = vector.load %arg7[%c0_66, %181, %c0_67] : memref<2x8x32xf32, #tpu.memory_space<vmem>>, vector<1x1x32xf32>
    %183 = vector.shape_cast %182 : vector<1x1x32xf32> to vector<1x32xf32>
    %184 = vector.shape_cast %180 : vector<1x32xf32> to vector<1x1x32xf32>
    tpu.vector_store %arg7[%c0_66, %181, %c0_67], %184 {strides = array<i32>} : memref<2x8x32xf32, #tpu.memory_space<vmem>>, vector<1x1x32xf32>,
    %185 = vector.extract_strided_slice %169 {offsets = [0, 32], sizes = [1, 32], strides = [1, 1]} : vector<1x64xf32> to vector<1x32xf32>
    %c1_68 = arith.constant 1 : index
    %186 = arith.index_cast %148 : i32 to index
    %c0_69 = arith.constant 0 : index
    %187 = vector.load %arg7[%c1_68, %186, %c0_69] : memref<2x8x32xf32, #tpu.memory_space<vmem>>, vector<1x1x32xf32>
    %188 = vector.shape_cast %187 : vector<1x1x32xf32> to vector<1x32xf32>
    %189 = vector.shape_cast %185 : vector<1x32xf32> to vector<1x1x32xf32>
    tpu.vector_store %arg7[%c1_68, %186, %c0_69], %189 {strides = array<i32>} : memref<2x8x32xf32, #tpu.memory_space<vmem>>, vector<1x1x32xf32>,
    %c8_i32_70 = arith.constant 8 : i32
    %190 = arith.muli %c0_i32, %c8_i32_70 : i32
    %c4_i32 = arith.constant 4 : i32
    %191 = arith.addi %190, %c4_i32 : i32
    %c7_i32_71 = arith.constant 7 : i32
    %192 = arith.subi %c7_i32_71, %191 : i32
    %193 = arith.index_cast %191 : i32 to index
    %c0_72 = arith.constant 0 : index
    %194 = vector.load %arg8[%193, %c0_72] : memref<8x256xf32, #tpu.memory_space<vmem>>, vector<1x256xf32>
    %cst_73 = arith.constant dense<0.000000e+00> : vector<1x256xf32>
    %195 = tpu.matmul %169, %15, %cst_73 {dimension_numbers = #tpu.dot_dimension_numbers<[1], [0], [0], [1], [0, 0, 1, 1], [], []>} : vector<1x64xf32>, vector<64x256xf32>, vector<1x256xf32> -> vector<1x256xf32>
    %196 = arith.addf %194, %195 : vector<1x256xf32>
    %197 = vector.extract_strided_slice %196 {offsets = [0, 0], sizes = [1, 192], strides = [1, 1]} : vector<1x256xf32> to vector<1x192xf32>
    %198 = arith.negf %197 : vector<1x192xf32>
    %199 = math.exp %198 : vector<1x192xf32>
    %cst_74 = arith.constant 1.000000e+00 : f32
    %200 = vector.broadcast %cst_74 : f32 to vector<1x192xf32>
    %201 = arith.addf %200, %199 : vector<1x192xf32>
    %202 = arith.divf %200, %201 : vector<1x192xf32>
    %203 = vector.extract_strided_slice %202 {offsets = [0, 0], sizes = [1, 64], strides = [1, 1]} : vector<1x192xf32> to vector<1x64xf32>
    %204 = vector.extract_strided_slice %202 {offsets = [0, 64], sizes = [1, 64], strides = [1, 1]} : vector<1x192xf32> to vector<1x64xf32>
    %205 = vector.extract_strided_slice %202 {offsets = [0, 128], sizes = [1, 64], strides = [1, 1]} : vector<1x192xf32> to vector<1x64xf32>
    %206 = vector.extract_strided_slice %196 {offsets = [0, 192], sizes = [1, 64], strides = [1, 1]} : vector<1x256xf32> to vector<1x64xf32>
    %207 = math.tanh %206 : vector<1x64xf32>
    %208 = arith.mulf %204, %167 : vector<1x64xf32>
    %209 = arith.mulf %203, %207 : vector<1x64xf32>
    %210 = arith.addf %208, %209 : vector<1x64xf32>
    %211 = math.tanh %210 : vector<1x64xf32>
    %212 = arith.mulf %205, %211 : vector<1x64xf32>
    %213 = vector.extract_strided_slice %212 {offsets = [0, 0], sizes = [1, 32], strides = [1, 1]} : vector<1x64xf32> to vector<1x32xf32>
    %c0_75 = arith.constant 0 : index
    %214 = arith.index_cast %191 : i32 to index
    %c0_76 = arith.constant 0 : index
    %215 = vector.load %arg6[%c0_75, %214, %c0_76] : memref<2x8x32xf32, #tpu.memory_space<vmem>>, vector<1x1x32xf32>
    %216 = vector.shape_cast %215 : vector<1x1x32xf32> to vector<1x32xf32>
    %217 = vector.shape_cast %213 : vector<1x32xf32> to vector<1x1x32xf32>
    tpu.vector_store %arg6[%c0_75, %214, %c0_76], %217 {strides = array<i32>} : memref<2x8x32xf32, #tpu.memory_space<vmem>>, vector<1x1x32xf32>,
    %218 = vector.extract_strided_slice %212 {offsets = [0, 32], sizes = [1, 32], strides = [1, 1]} : vector<1x64xf32> to vector<1x32xf32>
    %c1_77 = arith.constant 1 : index
    %219 = arith.index_cast %192 : i32 to index
    %c0_78 = arith.constant 0 : index
    %220 = vector.load %arg6[%c1_77, %219, %c0_78] : memref<2x8x32xf32, #tpu.memory_space<vmem>>, vector<1x1x32xf32>
    %221 = vector.shape_cast %220 : vector<1x1x32xf32> to vector<1x32xf32>
    %222 = vector.shape_cast %218 : vector<1x32xf32> to vector<1x1x32xf32>
    tpu.vector_store %arg6[%c1_77, %219, %c0_78], %222 {strides = array<i32>} : memref<2x8x32xf32, #tpu.memory_space<vmem>>, vector<1x1x32xf32>,
    %223 = vector.extract_strided_slice %212 {offsets = [0, 0], sizes = [1, 32], strides = [1, 1]} : vector<1x64xf32> to vector<1x32xf32>
    %c0_79 = arith.constant 0 : index
    %224 = arith.index_cast %192 : i32 to index
    %c0_80 = arith.constant 0 : index
    %225 = vector.load %arg7[%c0_79, %224, %c0_80] : memref<2x8x32xf32, #tpu.memory_space<vmem>>, vector<1x1x32xf32>
    %226 = vector.shape_cast %225 : vector<1x1x32xf32> to vector<1x32xf32>
    %227 = vector.shape_cast %223 : vector<1x32xf32> to vector<1x1x32xf32>
    tpu.vector_store %arg7[%c0_79, %224, %c0_80], %227 {strides = array<i32>} : memref<2x8x32xf32, #tpu.memory_space<vmem>>, vector<1x1x32xf32>,
    %228 = vector.extract_strided_slice %212 {offsets = [0, 32], sizes = [1, 32], strides = [1, 1]} : vector<1x64xf32> to vector<1x32xf32>
    %c1_81 = arith.constant 1 : index
    %229 = arith.index_cast %191 : i32 to index
    %c0_82 = arith.constant 0 : index
    %230 = vector.load %arg7[%c1_81, %229, %c0_82] : memref<2x8x32xf32, #tpu.memory_space<vmem>>, vector<1x1x32xf32>
    %231 = vector.shape_cast %230 : vector<1x1x32xf32> to vector<1x32xf32>
    %232 = vector.shape_cast %228 : vector<1x32xf32> to vector<1x1x32xf32>
    tpu.vector_store %arg7[%c1_81, %229, %c0_82], %232 {strides = array<i32>} : memref<2x8x32xf32, #tpu.memory_space<vmem>>, vector<1x1x32xf32>,
    %c8_i32_83 = arith.constant 8 : i32
    %233 = arith.muli %c0_i32, %c8_i32_83 : i32
    %c5_i32 = arith.constant 5 : i32
    %234 = arith.addi %233, %c5_i32 : i32
    %c7_i32_84 = arith.constant 7 : i32
    %235 = arith.subi %c7_i32_84, %234 : i32
    %236 = arith.index_cast %234 : i32 to index
    %c0_85 = arith.constant 0 : index
    %237 = vector.load %arg8[%236, %c0_85] : memref<8x256xf32, #tpu.memory_space<vmem>>, vector<1x256xf32>
    %cst_86 = arith.constant dense<0.000000e+00> : vector<1x256xf32>
    %238 = tpu.matmul %212, %15, %cst_86 {dimension_numbers = #tpu.dot_dimension_numbers<[1], [0], [0], [1], [0, 0, 1, 1], [], []>} : vector<1x64xf32>, vector<64x256xf32>, vector<1x256xf32> -> vector<1x256xf32>
    %239 = arith.addf %237, %238 : vector<1x256xf32>
    %240 = vector.extract_strided_slice %239 {offsets = [0, 0], sizes = [1, 192], strides = [1, 1]} : vector<1x256xf32> to vector<1x192xf32>
    %241 = arith.negf %240 : vector<1x192xf32>
    %242 = math.exp %241 : vector<1x192xf32>
    %cst_87 = arith.constant 1.000000e+00 : f32
    %243 = vector.broadcast %cst_87 : f32 to vector<1x192xf32>
    %244 = arith.addf %243, %242 : vector<1x192xf32>
    %245 = arith.divf %243, %244 : vector<1x192xf32>
    %246 = vector.extract_strided_slice %245 {offsets = [0, 0], sizes = [1, 64], strides = [1, 1]} : vector<1x192xf32> to vector<1x64xf32>
    %247 = vector.extract_strided_slice %245 {offsets = [0, 64], sizes = [1, 64], strides = [1, 1]} : vector<1x192xf32> to vector<1x64xf32>
    %248 = vector.extract_strided_slice %245 {offsets = [0, 128], sizes = [1, 64], strides = [1, 1]} : vector<1x192xf32> to vector<1x64xf32>
    %249 = vector.extract_strided_slice %239 {offsets = [0, 192], sizes = [1, 64], strides = [1, 1]} : vector<1x256xf32> to vector<1x64xf32>
    %250 = math.tanh %249 : vector<1x64xf32>
    %251 = arith.mulf %247, %210 : vector<1x64xf32>
    %252 = arith.mulf %246, %250 : vector<1x64xf32>
    %253 = arith.addf %251, %252 : vector<1x64xf32>
    %254 = math.tanh %253 : vector<1x64xf32>
    %255 = arith.mulf %248, %254 : vector<1x64xf32>
    %256 = vector.extract_strided_slice %255 {offsets = [0, 0], sizes = [1, 32], strides = [1, 1]} : vector<1x64xf32> to vector<1x32xf32>
    %c0_88 = arith.constant 0 : index
    %257 = arith.index_cast %234 : i32 to index
    %c0_89 = arith.constant 0 : index
    %258 = vector.load %arg6[%c0_88, %257, %c0_89] : memref<2x8x32xf32, #tpu.memory_space<vmem>>, vector<1x1x32xf32>
    %259 = vector.shape_cast %258 : vector<1x1x32xf32> to vector<1x32xf32>
    %260 = vector.shape_cast %256 : vector<1x32xf32> to vector<1x1x32xf32>
    tpu.vector_store %arg6[%c0_88, %257, %c0_89], %260 {strides = array<i32>} : memref<2x8x32xf32, #tpu.memory_space<vmem>>, vector<1x1x32xf32>,
    %261 = vector.extract_strided_slice %255 {offsets = [0, 32], sizes = [1, 32], strides = [1, 1]} : vector<1x64xf32> to vector<1x32xf32>
    %c1_90 = arith.constant 1 : index
    %262 = arith.index_cast %235 : i32 to index
    %c0_91 = arith.constant 0 : index
    %263 = vector.load %arg6[%c1_90, %262, %c0_91] : memref<2x8x32xf32, #tpu.memory_space<vmem>>, vector<1x1x32xf32>
    %264 = vector.shape_cast %263 : vector<1x1x32xf32> to vector<1x32xf32>
    %265 = vector.shape_cast %261 : vector<1x32xf32> to vector<1x1x32xf32>
    tpu.vector_store %arg6[%c1_90, %262, %c0_91], %265 {strides = array<i32>} : memref<2x8x32xf32, #tpu.memory_space<vmem>>, vector<1x1x32xf32>,
    %266 = vector.extract_strided_slice %255 {offsets = [0, 0], sizes = [1, 32], strides = [1, 1]} : vector<1x64xf32> to vector<1x32xf32>
    %c0_92 = arith.constant 0 : index
    %267 = arith.index_cast %235 : i32 to index
    %c0_93 = arith.constant 0 : index
    %268 = vector.load %arg7[%c0_92, %267, %c0_93] : memref<2x8x32xf32, #tpu.memory_space<vmem>>, vector<1x1x32xf32>
    %269 = vector.shape_cast %268 : vector<1x1x32xf32> to vector<1x32xf32>
    %270 = vector.shape_cast %266 : vector<1x32xf32> to vector<1x1x32xf32>
    tpu.vector_store %arg7[%c0_92, %267, %c0_93], %270 {strides = array<i32>} : memref<2x8x32xf32, #tpu.memory_space<vmem>>, vector<1x1x32xf32>,
    %271 = vector.extract_strided_slice %255 {offsets = [0, 32], sizes = [1, 32], strides = [1, 1]} : vector<1x64xf32> to vector<1x32xf32>
    %c1_94 = arith.constant 1 : index
    %272 = arith.index_cast %234 : i32 to index
    %c0_95 = arith.constant 0 : index
    %273 = vector.load %arg7[%c1_94, %272, %c0_95] : memref<2x8x32xf32, #tpu.memory_space<vmem>>, vector<1x1x32xf32>
    %274 = vector.shape_cast %273 : vector<1x1x32xf32> to vector<1x32xf32>
    %275 = vector.shape_cast %271 : vector<1x32xf32> to vector<1x1x32xf32>
    tpu.vector_store %arg7[%c1_94, %272, %c0_95], %275 {strides = array<i32>} : memref<2x8x32xf32, #tpu.memory_space<vmem>>, vector<1x1x32xf32>,
    %c8_i32_96 = arith.constant 8 : i32
    %276 = arith.muli %c0_i32, %c8_i32_96 : i32
    %c6_i32 = arith.constant 6 : i32
    %277 = arith.addi %276, %c6_i32 : i32
    %c7_i32_97 = arith.constant 7 : i32
    %278 = arith.subi %c7_i32_97, %277 : i32
    %279 = arith.index_cast %277 : i32 to index
    %c0_98 = arith.constant 0 : index
    %280 = vector.load %arg8[%279, %c0_98] : memref<8x256xf32, #tpu.memory_space<vmem>>, vector<1x256xf32>
    %cst_99 = arith.constant dense<0.000000e+00> : vector<1x256xf32>
    %281 = tpu.matmul %255, %15, %cst_99 {dimension_numbers = #tpu.dot_dimension_numbers<[1], [0], [0], [1], [0, 0, 1, 1], [], []>} : vector<1x64xf32>, vector<64x256xf32>, vector<1x256xf32> -> vector<1x256xf32>
    %282 = arith.addf %280, %281 : vector<1x256xf32>
    %283 = vector.extract_strided_slice %282 {offsets = [0, 0], sizes = [1, 192], strides = [1, 1]} : vector<1x256xf32> to vector<1x192xf32>
    %284 = arith.negf %283 : vector<1x192xf32>
    %285 = math.exp %284 : vector<1x192xf32>
    %cst_100 = arith.constant 1.000000e+00 : f32
    %286 = vector.broadcast %cst_100 : f32 to vector<1x192xf32>
    %287 = arith.addf %286, %285 : vector<1x192xf32>
    %288 = arith.divf %286, %287 : vector<1x192xf32>
    %289 = vector.extract_strided_slice %288 {offsets = [0, 0], sizes = [1, 64], strides = [1, 1]} : vector<1x192xf32> to vector<1x64xf32>
    %290 = vector.extract_strided_slice %288 {offsets = [0, 64], sizes = [1, 64], strides = [1, 1]} : vector<1x192xf32> to vector<1x64xf32>
    %291 = vector.extract_strided_slice %288 {offsets = [0, 128], sizes = [1, 64], strides = [1, 1]} : vector<1x192xf32> to vector<1x64xf32>
    %292 = vector.extract_strided_slice %282 {offsets = [0, 192], sizes = [1, 64], strides = [1, 1]} : vector<1x256xf32> to vector<1x64xf32>
    %293 = math.tanh %292 : vector<1x64xf32>
    %294 = arith.mulf %290, %253 : vector<1x64xf32>
    %295 = arith.mulf %289, %293 : vector<1x64xf32>
    %296 = arith.addf %294, %295 : vector<1x64xf32>
    %297 = math.tanh %296 : vector<1x64xf32>
    %298 = arith.mulf %291, %297 : vector<1x64xf32>
    %299 = vector.extract_strided_slice %298 {offsets = [0, 0], sizes = [1, 32], strides = [1, 1]} : vector<1x64xf32> to vector<1x32xf32>
    %c0_101 = arith.constant 0 : index
    %300 = arith.index_cast %277 : i32 to index
    %c0_102 = arith.constant 0 : index
    %301 = vector.load %arg6[%c0_101, %300, %c0_102] : memref<2x8x32xf32, #tpu.memory_space<vmem>>, vector<1x1x32xf32>
    %302 = vector.shape_cast %301 : vector<1x1x32xf32> to vector<1x32xf32>
    %303 = vector.shape_cast %299 : vector<1x32xf32> to vector<1x1x32xf32>
    tpu.vector_store %arg6[%c0_101, %300, %c0_102], %303 {strides = array<i32>} : memref<2x8x32xf32, #tpu.memory_space<vmem>>, vector<1x1x32xf32>,
    %304 = vector.extract_strided_slice %298 {offsets = [0, 32], sizes = [1, 32], strides = [1, 1]} : vector<1x64xf32> to vector<1x32xf32>
    %c1_103 = arith.constant 1 : index
    %305 = arith.index_cast %278 : i32 to index
    %c0_104 = arith.constant 0 : index
    %306 = vector.load %arg6[%c1_103, %305, %c0_104] : memref<2x8x32xf32, #tpu.memory_space<vmem>>, vector<1x1x32xf32>
    %307 = vector.shape_cast %306 : vector<1x1x32xf32> to vector<1x32xf32>
    %308 = vector.shape_cast %304 : vector<1x32xf32> to vector<1x1x32xf32>
    tpu.vector_store %arg6[%c1_103, %305, %c0_104], %308 {strides = array<i32>} : memref<2x8x32xf32, #tpu.memory_space<vmem>>, vector<1x1x32xf32>,
    %309 = vector.extract_strided_slice %298 {offsets = [0, 0], sizes = [1, 32], strides = [1, 1]} : vector<1x64xf32> to vector<1x32xf32>
    %c0_105 = arith.constant 0 : index
    %310 = arith.index_cast %278 : i32 to index
    %c0_106 = arith.constant 0 : index
    %311 = vector.load %arg7[%c0_105, %310, %c0_106] : memref<2x8x32xf32, #tpu.memory_space<vmem>>, vector<1x1x32xf32>
    %312 = vector.shape_cast %311 : vector<1x1x32xf32> to vector<1x32xf32>
    %313 = vector.shape_cast %309 : vector<1x32xf32> to vector<1x1x32xf32>
    tpu.vector_store %arg7[%c0_105, %310, %c0_106], %313 {strides = array<i32>} : memref<2x8x32xf32, #tpu.memory_space<vmem>>, vector<1x1x32xf32>,
    %314 = vector.extract_strided_slice %298 {offsets = [0, 32], sizes = [1, 32], strides = [1, 1]} : vector<1x64xf32> to vector<1x32xf32>
    %c1_107 = arith.constant 1 : index
    %315 = arith.index_cast %277 : i32 to index
    %c0_108 = arith.constant 0 : index
    %316 = vector.load %arg7[%c1_107, %315, %c0_108] : memref<2x8x32xf32, #tpu.memory_space<vmem>>, vector<1x1x32xf32>
    %317 = vector.shape_cast %316 : vector<1x1x32xf32> to vector<1x32xf32>
    %318 = vector.shape_cast %314 : vector<1x32xf32> to vector<1x1x32xf32>
    tpu.vector_store %arg7[%c1_107, %315, %c0_108], %318 {strides = array<i32>} : memref<2x8x32xf32, #tpu.memory_space<vmem>>, vector<1x1x32xf32>,
    %c8_i32_109 = arith.constant 8 : i32
    %319 = arith.muli %c0_i32, %c8_i32_109 : i32
    %c7_i32_110 = arith.constant 7 : i32
    %320 = arith.addi %319, %c7_i32_110 : i32
    %c7_i32_111 = arith.constant 7 : i32
    %321 = arith.subi %c7_i32_111, %320 : i32
    %322 = arith.index_cast %320 : i32 to index
    %c0_112 = arith.constant 0 : index
    %323 = vector.load %arg8[%322, %c0_112] : memref<8x256xf32, #tpu.memory_space<vmem>>, vector<1x256xf32>
    %cst_113 = arith.constant dense<0.000000e+00> : vector<1x256xf32>
    %324 = tpu.matmul %298, %15, %cst_113 {dimension_numbers = #tpu.dot_dimension_numbers<[1], [0], [0], [1], [0, 0, 1, 1], [], []>} : vector<1x64xf32>, vector<64x256xf32>, vector<1x256xf32> -> vector<1x256xf32>
    %325 = arith.addf %323, %324 : vector<1x256xf32>
    %326 = vector.extract_strided_slice %325 {offsets = [0, 0], sizes = [1, 192], strides = [1, 1]} : vector<1x256xf32> to vector<1x192xf32>
    %327 = arith.negf %326 : vector<1x192xf32>
    %328 = math.exp %327 : vector<1x192xf32>
    %cst_114 = arith.constant 1.000000e+00 : f32
    %329 = vector.broadcast %cst_114 : f32 to vector<1x192xf32>
    %330 = arith.addf %329, %328 : vector<1x192xf32>
    %331 = arith.divf %329, %330 : vector<1x192xf32>
    %332 = vector.extract_strided_slice %331 {offsets = [0, 0], sizes = [1, 64], strides = [1, 1]} : vector<1x192xf32> to vector<1x64xf32>
    %333 = vector.extract_strided_slice %331 {offsets = [0, 64], sizes = [1, 64], strides = [1, 1]} : vector<1x192xf32> to vector<1x64xf32>
    %334 = vector.extract_strided_slice %331 {offsets = [0, 128], sizes = [1, 64], strides = [1, 1]} : vector<1x192xf32> to vector<1x64xf32>
    %335 = vector.extract_strided_slice %325 {offsets = [0, 192], sizes = [1, 64], strides = [1, 1]} : vector<1x256xf32> to vector<1x64xf32>
    %336 = math.tanh %335 : vector<1x64xf32>
    %337 = arith.mulf %333, %296 : vector<1x64xf32>
    %338 = arith.mulf %332, %336 : vector<1x64xf32>
    %339 = arith.addf %337, %338 : vector<1x64xf32>
    %340 = math.tanh %339 : vector<1x64xf32>
    %341 = arith.mulf %334, %340 : vector<1x64xf32>
    %342 = vector.extract_strided_slice %341 {offsets = [0, 0], sizes = [1, 32], strides = [1, 1]} : vector<1x64xf32> to vector<1x32xf32>
    %c0_115 = arith.constant 0 : index
    %343 = arith.index_cast %320 : i32 to index
    %c0_116 = arith.constant 0 : index
    %344 = vector.load %arg6[%c0_115, %343, %c0_116] : memref<2x8x32xf32, #tpu.memory_space<vmem>>, vector<1x1x32xf32>
    %345 = vector.shape_cast %344 : vector<1x1x32xf32> to vector<1x32xf32>
    %346 = vector.shape_cast %342 : vector<1x32xf32> to vector<1x1x32xf32>
    tpu.vector_store %arg6[%c0_115, %343, %c0_116], %346 {strides = array<i32>} : memref<2x8x32xf32, #tpu.memory_space<vmem>>, vector<1x1x32xf32>,
    %347 = vector.extract_strided_slice %341 {offsets = [0, 32], sizes = [1, 32], strides = [1, 1]} : vector<1x64xf32> to vector<1x32xf32>
    %c1_117 = arith.constant 1 : index
    %348 = arith.index_cast %321 : i32 to index
    %c0_118 = arith.constant 0 : index
    %349 = vector.load %arg6[%c1_117, %348, %c0_118] : memref<2x8x32xf32, #tpu.memory_space<vmem>>, vector<1x1x32xf32>
    %350 = vector.shape_cast %349 : vector<1x1x32xf32> to vector<1x32xf32>
    %351 = vector.shape_cast %347 : vector<1x32xf32> to vector<1x1x32xf32>
    tpu.vector_store %arg6[%c1_117, %348, %c0_118], %351 {strides = array<i32>} : memref<2x8x32xf32, #tpu.memory_space<vmem>>, vector<1x1x32xf32>,
    %352 = vector.extract_strided_slice %341 {offsets = [0, 0], sizes = [1, 32], strides = [1, 1]} : vector<1x64xf32> to vector<1x32xf32>
    %c0_119 = arith.constant 0 : index
    %353 = arith.index_cast %321 : i32 to index
    %c0_120 = arith.constant 0 : index
    %354 = vector.load %arg7[%c0_119, %353, %c0_120] : memref<2x8x32xf32, #tpu.memory_space<vmem>>, vector<1x1x32xf32>
    %355 = vector.shape_cast %354 : vector<1x1x32xf32> to vector<1x32xf32>
    %356 = vector.shape_cast %352 : vector<1x32xf32> to vector<1x1x32xf32>
    tpu.vector_store %arg7[%c0_119, %353, %c0_120], %356 {strides = array<i32>} : memref<2x8x32xf32, #tpu.memory_space<vmem>>, vector<1x1x32xf32>,
    %357 = vector.extract_strided_slice %341 {offsets = [0, 32], sizes = [1, 32], strides = [1, 1]} : vector<1x64xf32> to vector<1x32xf32>
    %c1_121 = arith.constant 1 : index
    %358 = arith.index_cast %320 : i32 to index
    %c0_122 = arith.constant 0 : index
    %359 = vector.load %arg7[%c1_121, %358, %c0_122] : memref<2x8x32xf32, #tpu.memory_space<vmem>>, vector<1x1x32xf32>
    %360 = vector.shape_cast %359 : vector<1x1x32xf32> to vector<1x32xf32>
    %361 = vector.shape_cast %357 : vector<1x32xf32> to vector<1x1x32xf32>
    tpu.vector_store %arg7[%c1_121, %358, %c0_122], %361 {strides = array<i32>} : memref<2x8x32xf32, #tpu.memory_space<vmem>>, vector<1x1x32xf32>,
    %c1_i32_123 = arith.constant 1 : i32
    return
  }
}

</mosaic_0001>

<bundles_post_ra>
// kernel: tpu_custom_call.1
= control target key start
LH: loop header
LB: loop body
LE: loop exit
PB: predicated region body
PF: predicated region fallthrough
CT: control target
= control target key end

     0   :  { %13 = vsyncpa [#allocation4], 0  ;;  %s2198_s0 = inlined_call_operand.hbm [shape: f32[1,8,40], index: 0, kind: input, shape index: {}]   ;;  %s2199_s1 = inlined_call_operand.hbm [shape: f32[1,8,40], index: 1, kind: input, shape index: {}]   ;;  %s2200_s2 = inlined_call_operand.hbm [shape: f32[1,40,256], index: 2, kind: input, shape index: {}]   ;;  %s2201_s3 = inlined_call_operand.hbm [shape: f32[1,40,256], index: 3, kind: input, shape index: {}]   ;;  %s2202_s4 = inlined_call_operand.hbm [shape: f32[64,256], index: 4, kind: input, shape index: {}]   ;;  %s2203_s5 = inlined_call_operand.vmem [shape: f32[1,256], index: 5, kind: input, shape index: {}]   ;;  %s2204_s6 = inlined_call_operand.hbm [shape: f32[2,8,32], index: 6, kind: output, shape index: {0}]   ;;  %s2205_s7 = inlined_call_operand.hbm [shape: f32[2,8,32], index: 7, kind: output, shape index: {1}]  }
   0x1   :  { %14 = vsyncpa [#allocation7], 0 }
   0x2   :  { %15 = vsyncpa [#allocation10], 0 }
   0x3   :  { %16 = vsyncpa [#allocation5], 0 }
   0x4   :  { %17 = vsyncpa [#allocation14], 0  ;;  %s1811_s24 = smov [#allocation6]   ;;  %s1647_s28 = scalar_lea.hbm %s2199_s1, 128 }
   0x5   :  { %s34_s25 = sshll.u32 %s1811_s24, 4  ;;  %p1648_p0 = scmp.ne.s32.totalorder %s2199_s1, %s1647_s28  ;;  %s35_s25 = int_to_ptr.vmem [resolvable:$true] %s34_s25 }
   0x6   :  { %p1651_p1 = scmp.lt.u32.totalorder %s1647_s28, %s2199_s1 }
   0x8   :  { %p1653_p2 = pnand %p1651_p1, %p1648_p0 }
   0xa   :  { %1656 = shalt.err (!%p1653_p2)
}
   0xb   :  { %s1657_s10 = scalar_lea.vmem %s35_s25, 128  ;;  %p1662_p4 = scmp.lt.s32.totalorder %s35_s25, %s35_s25 }
   0xc   :  { %p1658_p3 = scmp.ne.s32.totalorder %s35_s25, %s1657_s10  ;;  %p1663_p5 = scmp.lt.s32.totalorder %s1657_s10, %s1657_s10 }
   0xe   :  { %p1664_p6 = por %p1663_p5, %p1662_p4 }
  0x10   :  { %p1665_p7 = pnand %p1664_p6, %p1658_p3 }
  0x12   :  { %1668 = shalt.err (!%p1665_p7)
}
  0x13   :  { %37 = dma.hbm_to_vmem [thread:$0]  %s2199_s1, 128, %s35_s25, [#allocation7]  }
  0x14   :  { %s1812_s13 = smov [#allocation9]   ;;  %s1813_s15 = smov [#allocation3]  }
  0x15   :  { %s55_s14 = sshll.u32 %s1812_s13, 4  ;;  %s24_s16 = sshll.u32 %s1813_s15, 4  ;;  %s56_s14 = int_to_ptr.vmem [resolvable:$true] %s55_s14  ;;  %s25_s16 = int_to_ptr.vmem [resolvable:$true] %s24_s16 }
  0x16   :  { %s1669_s19 = scalar_lea.hbm %s2201_s3, 1280 }
  0x17   :  { %p1670_p8 = scmp.ne.s32.totalorder %s2201_s3, %s1669_s19  ;;  %p1673_p9 = scmp.lt.u32.totalorder %s1669_s19, %s2201_s3 }
  0x19   :  { %p1675_p10 = pnand %p1673_p9, %p1670_p8 }
  0x1b   :  { %1678 = shalt.err (!%p1675_p10)
}
  0x1c   :  { %s1679_s1 = scalar_lea.vmem %s56_s14, 1280  ;;  %p1684_p12 = scmp.lt.s32.totalorder %s56_s14, %s56_s14 }
  0x1d   :  { %p1680_p11 = scmp.ne.s32.totalorder %s56_s14, %s1679_s1  ;;  %p1685_p13 = scmp.lt.s32.totalorder %s1679_s1, %s1679_s1 }
  0x1f   :  { %p1686_p0 = por %p1685_p13, %p1684_p12 }
  0x21   :  { %p1687_p1 = pnand %p1686_p0, %p1680_p11 }
  0x23   :  { %1690 = shalt.err (!%p1687_p1)
}
  0x24   :  { %s1814_s24 = smov 256   ;;  %s1815_s25 = smov 16  }
  0x25   :  { %61 = dma.hbm_to_vmem [thread:$0]  %s2201_s3, 1280, %s56_s14, [#allocation10], %s1814_s24, %s1814_s24, %s1815_s25  }
  0x26   :  { %s1691_s30 = scalar_lea.hbm %s2198_s0, 128 }
  0x27   :  { %p1692_p2 = scmp.ne.s32.totalorder %s2198_s0, %s1691_s30  ;;  %p1695_p3 = scmp.lt.u32.totalorder %s1691_s30, %s2198_s0 }
  0x29   :  { %p1697_p4 = pnand %p1695_p3, %p1692_p2 }
  0x2b   :  { %1700 = shalt.err (!%p1697_p4)
}
  0x2c   :  { %s1701_s12 = scalar_lea.vmem %s25_s16, 128  ;;  %p1706_p6 = scmp.lt.s32.totalorder %s25_s16, %s25_s16 }
  0x2d   :  { %p1702_p5 = scmp.ne.s32.totalorder %s25_s16, %s1701_s12  ;;  %p1707_p7 = scmp.lt.s32.totalorder %s1701_s12, %s1701_s12 }
  0x2f   :  { %p1708_p8 = por %p1707_p7, %p1706_p6 }
  0x31   :  { %p1709_p9 = pnand %p1708_p8, %p1702_p5 }
  0x33   :  { %1712 = shalt.err (!%p1709_p9)
}
  0x34   :  { %27 = dma.hbm_to_vmem [thread:$0]  %s2198_s0, 128, %s25_s16, [#allocation4]  }
  0x35   :  { %s1816_s14 = smov [#allocation8]   ;;  %s1817_s17 = smov [#allocation11]  }
  0x36   :  { %s43_s15 = sshll.u32 %s1816_s14, 4  ;;  %s67_s18 = sshll.u32 %s1817_s17, 4  ;;  %s44_s15 = int_to_ptr.vmem [resolvable:$true] %s43_s15  ;;  %s68_s18 = int_to_ptr.vmem [resolvable:$true] %s67_s18 }
  0x37   :  { %s1713_s21 = scalar_lea.hbm %s2200_s2, 1280 }
  0x38   :  { %p1714_p10 = scmp.ne.s32.totalorder %s2200_s2, %s1713_s21  ;;  %p1717_p11 = scmp.lt.u32.totalorder %s1713_s21, %s2200_s2 }
  0x3a   :  { %p1719_p12 = pnand %p1717_p11, %p1714_p10 }
  0x3c   :  { %1722 = shalt.err (!%p1719_p12)
}
  0x3d   :  { %s1723_s0 = scalar_lea.vmem %s44_s15, 1280  ;;  %p1728_p0 = scmp.lt.s32.totalorder %s44_s15, %s44_s15 }
  0x3e   :  { %p1724_p13 = scmp.ne.s32.totalorder %s44_s15, %s1723_s0  ;;  %p1729_p1 = scmp.lt.s32.totalorder %s1723_s0, %s1723_s0 }
  0x40   :  { %p1730_p2 = por %p1729_p1, %p1728_p0 }
  0x42   :  { %p1731_p3 = pnand %p1730_p2, %p1724_p13 }
  0x44   :  { %1734 = shalt.err (!%p1731_p3)
}
  0x45   :  { %49 = dma.hbm_to_vmem [thread:$0]  %s2200_s2, 1280, %s44_s15, [#allocation7], %s1814_s24, %s1814_s24, %s1815_s25  }
  0x46   :  { %s1735_s30 = scalar_lea.hbm %s2202_s4, 2048 }
  0x47   :  { %p1736_p4 = scmp.ne.s32.totalorder %s2202_s4, %s1735_s30  ;;  %p1739_p5 = scmp.lt.u32.totalorder %s1735_s30, %s2202_s4 }
  0x49   :  { %p1741_p6 = pnand %p1739_p5, %p1736_p4 }
  0x4b   :  { %1744 = shalt.err (!%p1741_p6)
}
  0x4c   :  { %s1745_s12 = scalar_lea.vmem %s68_s18, 2048  ;;  %p1750_p8 = scmp.lt.s32.totalorder %s68_s18, %s68_s18 }
  0x4d   :  { %p1746_p7 = scmp.ne.s32.totalorder %s68_s18, %s1745_s12  ;;  %p1751_p9 = scmp.lt.s32.totalorder %s1745_s12, %s1745_s12 }
  0x4f   :  { %p1752_p10 = por %p1751_p9, %p1750_p8 }
  0x51   :  { %p1753_p11 = pnand %p1752_p10, %p1746_p7 }
  0x53   :  { %1756 = shalt.err (!%p1753_p11)
}
  0x54   :  { %73 = dma.hbm_to_vmem [thread:$0]  %s2202_s4, 2048, %s68_s18, [#allocation10], %s1814_s24, %s1814_s24, %s1815_s25  }
  0x55   :  { %1801 = dma.done.wait [#allocation4], 128  }
  0x56   :  { %1802 = vsyncadd [#allocation4], 4294967168 }
  0x57   :  { %1803 = dma.done.wait [#allocation7], 1408  }
  0x58   :  { %1804 = vsyncadd [#allocation7], 4294965888 }
  0x59   :  { %1805 = dma.done.wait [#allocation10], 3328  }
  0x5a   :  { %1806 = vsyncadd [#allocation10], 4294963968  ;;  %v1818_v0 = vmov 0.0   ;;  %v104_v1 = vld [vmem:[#allocation9 + $0x8] sm:$0xff]  ;;  %v106_v2 = vld [vmem:[#allocation9 + $0x18] sm:$0xff]  ;;  %vm113_vm0 = vcmask 326656   ;;  %v264_v55 = vlaneseq }
  0x5b   :  { %181 = vmatprep.mubr.f32.mxu0 %v1818_v0  ;;  %363 = vmatprep.mubr.f32.mxu1 %v1818_v0  ;;  %v103_v3 = vld [vmem:[#allocation9] sm:$0xff]  ;;  %v1422_v4 = vpack.c.bf16 %v106_v2, %v104_v1  ;;  %v105_v5 = vld [vmem:[#allocation9 + $0x10] sm:$0xff]  ;;  %v108_v6 = vld [vmem:[#allocation9 + $0x28] sm:$0xff]  ;;  %v1819_v57 = vmov 1966171168   ;;  %vm417_vm1 = vcmask 253952  }
  0x5c   :  { %v110_v7 = vld [vmem:[#allocation9 + $0x38] sm:$0xff]  ;;  %v1424_v8 = vpack.c.bf16 %v105_v5, %v103_v3  ;;  %v107_v10 = vld [vmem:[#allocation9 + $0x20] sm:$0xff]  ;;  %v109_v11 = vld [vmem:[#allocation9 + $0x30] sm:$0xff]  ;;  %v265_v56 = vshrl.u32 %v264_v55, 7  ;;  %v374_v58 = vunpack.c.l.s4 %v1819_v57  ;;  %vm295_vm2 = vcmask 523264   ;;  %s1821_s25 = smov 96  }
  0x5d   :  { %v1426_v9 = vpack.c.bf16 %v110_v7, %v108_v6  ;;  %1423 = vmatprep.subr.bf16.mxu0 %v1422_v4  ;;  %v279_v12 = vld [vmem:[#allocation11 + $0x8] sm:$0xff]  ;;  %v281_v13 = vld [vmem:[#allocation11 + $0x18] sm:$0xff]  ;;  %v1428_v14 = vpack.c.bf16 %v109_v11, %v107_v10  ;;  %v278_v16 = vld [vmem:[#allocation11] sm:$0xff]  ;;  %s1822_s13 = smov [#allocation12]   ;;  %s1823_s15 = smov [#allocation13]  }
  0x5e   :  { %1425 = vmatpush1.bf16.msra.mxu0 %v1424_v8  ;;  %v1937_v15 = vpack.c.bf16 %v281_v13, %v279_v12  ;;  %v280_v17 = vld [vmem:[#allocation11 + $0x10] sm:$0xff]  ;;  %v112_v18 = vld [vmem:[#allocation9 + $0x48] sm:$0xff]  ;;  %v93_v20 = vld [vmem:[#allocation8 + $0x8] sm:$0xff]  ;;  %v1985_v59 = vsub.s32 0, %v265_v56  ;;  %v270_v61 = vsub.s32 1, %v265_v56  ;;  %v375_v62 = vunpack.c.0.s8 %v374_v58  ;;  %s1375_s14 = sshll.u32 %s1822_s13, 4  ;;  %s1376_s14 = int_to_ptr.vmem [resolvable:$true] %s1375_s14 }
  0x5f   :  { %1427 = vmatprep.subr.bf16.mxu0 %v1426_v9  ;;  %v1939_v19 = vpack.c.bf16 %v280_v17, %v278_v16  ;;  %v95_v21 = vld [vmem:[#allocation8 + $0x18] sm:$0xff]  ;;  %v92_v22 = vld [vmem:[#allocation8] sm:$0xff]  ;;  %v283_v23 = vld [vmem:[#allocation11 + $0x28] sm:$0xff]  ;;  %s1387_s17 = sshll.u32 %s1823_s15, 4  ;;  %s1757_s18 = scalar_lea.vmem %s1376_s14, 256  ;;  %s2165_s17 = int_to_ptr.vmem [resolvable:$true] %s1387_s17 }
  0x60   :  { %1439 = vmatprep.subr.bf16.mxu1 %v1937_v15  ;;  %v285_v24 = vld [vmem:[#allocation11 + $0x38] sm:$0xff]  ;;  %v94_v25 = vld [vmem:[#allocation8 + $0x10] sm:$0xff]  ;;  %v282_v27 = vld [vmem:[#allocation11 + $0x20] sm:$0xff]  ;;  %v1430_v33 = vpack.c.bf16 %v95_v21, %v93_v20  ;;  %v1991_v4 = vsub.s32 %v375_v62, %v265_v56  ;;  %p1758_p12 = scmp.ne.s32.totalorder %s1376_s14, %s1757_s18  ;;  %p1762_p13 = scmp.lt.s32.totalorder %s1376_s14, %s1376_s14 }
  0x61   :  { %1441 = vmatpush1.bf16.msra.mxu1 %v1939_v19  ;;  %v1943_v26 = vpack.c.bf16 %v285_v24, %v283_v23  ;;  %v284_v28 = vld [vmem:[#allocation11 + $0x30] sm:$0xff]  ;;  %v97_v31 = vld [vmem:[#allocation8 + $0x28] sm:$0xff]  ;;  %v99_v32 = vld [vmem:[#allocation8 + $0x38] sm:$0xff]  ;;  %v1432_v38 = vpack.c.bf16 %v94_v25, %v92_v22  ;;  %p1763_p0 = scmp.lt.s32.totalorder %s1757_s18, %s1757_s18 }
  0x62   :  { %1429 = vmatpush1.bf16.msra.mxu0 %v1428_v14  ;;  %v111_v29 = vld [vmem:[#allocation9 + $0x40] sm:$0xff]  ;;  %v1945_v30 = vpack.c.bf16 %v284_v28, %v282_v27  ;;  %v287_v34 = vld [vmem:[#allocation11 + $0x48] sm:$0xff]  ;;  %v289_v35 = vld [vmem:[#allocation11 + $0x58] sm:$0xff]  ;;  %v1434_v42 = vpack.c.bf16 %v99_v32, %v97_v31 }
  0x63   :  { %125 = vmatprep.subr.mxu0 %v112_v18  ;;  %1443 = vmatprep.subr.bf16.mxu1 %v1943_v26  ;;  %v286_v36 = vld [vmem:[#allocation11 + $0x40] sm:$0xff]  ;;  %v102_v37 = vld [vmem:[#allocation6] sm:$0xff]  ;;  %v1948_v40 = vpack.c.bf16 %v289_v35, %v287_v34  ;;  %v288_v41 = vld [vmem:[#allocation11 + $0x50] sm:$0xff]  ;;  %p1764_p1 = por %p1763_p0, %p1762_p13 }
  0x64   :  { %v96_v39 = vld [vmem:[#allocation8 + $0x20] sm:$0xff]  ;;  %v98_v43 = vld [vmem:[#allocation8 + $0x30] sm:$0xff]  ;;  %v1951_v44 = vpack.c.bf16 %v288_v41, %v286_v36  ;;  %v291_v45 = vld [vmem:[#allocation11 + $0x68] sm:$0xff] }
  0x65   :  { %1445 = vmatpush1.bf16.msra.mxu1 %v1945_v30  ;;  %v293_v46 = vld [vmem:[#allocation11 + $0x78] sm:$0xff]  ;;  %v290_v48 = vld [vmem:[#allocation11 + $0x60] sm:$0xff]  ;;  %v292_v49 = vld [vmem:[#allocation11 + $0x70] sm:$0xff]  ;;  %v1436_v50 = vpack.c.bf16 %v98_v43, %v96_v39  ;;  %p1765_p2 = pnand %p1764_p1, %p1758_p12 }
  0x66   :  { %126 = vmatpush1.msra.mxu0 %v111_v29  ;;  %1447 = vmatprep.subr.bf16.mxu1 %v1948_v40  ;;  %v1954_v47 = vpack.c.bf16 %v293_v46, %v291_v45  ;;  %v1959_v51 = vpack.c.bf16 %v292_v49, %v290_v48  ;;  %v101_v52 = vld [vmem:[#allocation8 + $0x48] sm:$0xff]  ;;  %v100_v53 = vld [vmem:[#allocation8 + $0x40] sm:$0xff]  ;;  %v91_v54 = vld [vmem:[#allocation3] sm:$0xff] }
  0x67   :  { %1431 = vmatprep.subr.bf16.mxu0 %v1430_v33  ;;  %1405 = vmatmul.mubr.msk.f32.vlgmr.msra.gmra.mrb[0].mxu0 %vm113_vm0, %v102_v37  ;;  %v262_v60 = vld [vmem:[%s2203_s5] sm:$0x3]  ;;  %s1820_s5 = smov 64  }
  0x68   :  { %1433 = vmatpush1.bf16.msra.mxu0 %v1432_v38  ;;  %255 = vmatprep.mubr.f32.mxu0 %v1818_v0  ;;  %v267_v63 = vrot.slane %v262_v60, %v1985_v59  ;;  %v271_v1 = vrot.slane %v262_v60, %v270_v61 }
  0x69   :  { %1435 = vmatprep.subr.bf16.mxu0 %v1434_v42  ;;  %1449 = vmatpush1.bf16.msra.mxu1 %v1951_v44 }
  0x6a   :  { %1451 = vmatprep.subr.bf16.mxu1 %v1954_v47 }
  0x6c   :  { %1437 = vmatpush1.bf16.msra.mxu0 %v1436_v50 }
  0x6d   :  { %199 = vmatprep.subr.mxu0 %v101_v52  ;;  %1453 = vmatpush1.bf16.msra.mxu1 %v1959_v51 }
  0x6e   :  { %1455 = vmatprep.subr.bf16.mxu1 %v1937_v15 }
  0x70   :  { %200 = vmatpush1.msra.mxu0 %v100_v53  ;;  %364 = vmatmul.mubr.f32.vlgmr.msra.gmra.mrb[0].mxu1 %v1818_v0 }
  0x71   :  { %1406 = vmatmul.mubr.msk.f32.vlgmr.msra.gmra.mrb[0].mxu0 %vm113_vm0, %v91_v54  ;;  %1457 = vmatpush1.bf16.msra.mxu1 %v1939_v19 }
  0x72   :  { %1459 = vmatprep.subr.bf16.mxu1 %v1943_v26  ;;  %500 = vmatprep.mubr.f32.mxu1 %v1818_v0 }
  0x73   :  { %1471 = vmatprep.subr.bf16.mxu0 %v1937_v15  ;;  %634 = vmatprep.mubr.f32.mxu0 %v1818_v0 }
  0x74   :  { %1473 = vmatpush1.bf16.msra.mxu0 %v1939_v19 }
  0x75   :  { %1461 = vmatpush1.bf16.msra.mxu1 %v1945_v30  ;;  %1475 = vmatprep.subr.bf16.mxu0 %v1943_v26 }
  0x76   :  { %1463 = vmatprep.subr.bf16.mxu1 %v1948_v40 }
  0x78   :  { %1477 = vmatpush1.bf16.msra.mxu0 %v1945_v30 }
  0x79   :  { %1465 = vmatpush1.bf16.msra.mxu1 %v1951_v44  ;;  %1479 = vmatprep.subr.bf16.mxu0 %v1948_v40 }
  0x7a   :  { %1467 = vmatprep.subr.bf16.mxu1 %v1954_v47 }
  0x7c   :  { %1481 = vmatpush1.bf16.msra.mxu0 %v1951_v44 }
  0x7d   :  { %1469 = vmatpush1.bf16.msra.mxu1 %v1959_v51  ;;  %1483 = vmatprep.subr.bf16.mxu0 %v1954_v47 }
  0x7e   :  { %1487 = vmatprep.subr.bf16.mxu1 %v1937_v15 }
  0x80   :  { %1485 = vmatpush1.bf16.msra.mxu0 %v1959_v51 }
  0x81   :  { %1503 = vmatprep.subr.bf16.mxu0 %v1937_v15 }
 0x143   :  { %v365_v2 = vpop.f32.mrb[0].mxu1 }
 0x144   :  { %v257_v3 = vpop.f32.mrb[0].mxu0  ;;  %v367_v5 = vpop.f32.mrb[1].mxu1 }
 0x145   :  { %v274_v6 = vadd.f32 %v267_v63, %v257_v3  ;;  %v259_v7 = vpop.f32.mrb[1].mxu0  ;;  %v372_v8 = vcombine.low %v365_v2, %v367_v5 }
 0x146   :  { %v275_v9 = vadd.f32 %v271_v1, %v259_v7 }
 0x147   :  { %276 = vst [vmem:[#allocation2] sm:$0xff] %v274_v6  ;;  %v379_v10 = vrot.slane %v372_v8, %v1991_v4 }
 0x148   :  { %277 = vst [vmem:[#allocation2 + $0x8] sm:$0xff] %v275_v9 }
 0x149   :  { %v386_v11 = vrot.slane %v379_v10, %v1991_v4 }
 0x14f   :  { %v294_v12 = vld [vmem:[#allocation2] ss:$8 sm:$0x3]  ;;  %v433_v38 = vld [vmem:[#allocation2 + $0x1] ss:$8 sm:$0x3] }
 0x150   :  { %v388_v13 = vadd.f32 %v386_v11, %v294_v12  ;;  %v567_v2 = vld [vmem:[#allocation2 + $0x2] ss:$8 sm:$0x3] }
 0x152   :  { %396 = vrot.lane.b32.xlu0 %v388_v13, %s1820_s5  ;;  %v1407_v14 = vmul.f32 -1.442695, %v388_v13 }
 0x154   :  { %1583 = vpow2.f32 %v1407_v14 }
 0x15e   :  { %v1584_v16 = vpop.eup %1583 }
 0x15f   :  { %v392_v17 = vadd.f32 1.0, %v1584_v16 }
 0x161   :  { %1585 = vrcp.f32 %v392_v17 }
 0x16b   :  { %v1586_v21 = vpop.eup %1585 }
 0x16c   :  { %v401_v24 = vmul.f32 0.0, %v1586_v21  ;;  %v410_v29 = vrot.slane %v1586_v21, 1 }
 0x1c4   :  { %v397_v18 = vpop.permute.xlu0 %396 }
 0x1c5   :  { %v398_v20 = vrot.slane %v397_v18, 1 }
 0x1c7   :  { %1587 = vtanh.f32 %v398_v20 }
 0x1d1   :  { %v1588_v22 = vpop.eup %1587 }
 0x1d2   :  { %v402_v23 = vmul.f32 %v1588_v22, %v1586_v21 }
 0x1d4   :  { %404 = vrot.lane.b32.xlu0 %v402_v23, %s1820_s5 }
 0x246   :  { %v405_v25 = vpop.permute.xlu0 %404 }
 0x247   :  { %v407_v27 = vadd.f32 %v405_v25, %v401_v24 }
 0x249   :  { %1589 = vtanh.f32 %v407_v27 }
 0x253   :  { %v1590_v28 = vpop.eup %1589 }
 0x254   :  { %413 = vrot.lane.b32.xlu1 %v1590_v28, %s1820_s5  ;;  %v701_v28 = vld [vmem:[#allocation2 + $0x3] ss:$8 sm:$0x3] }
 0x2c6   :  { %v414_v31 = vpop.permute.xlu1 %413 }
 0x2c7   :  { %v1998_v32 = vmul.f32 %v414_v31, %v410_v29 }
 0x2c9   :  { %418 = vst.msk [vmem:[#allocation12] sm:$0x1] %vm417_vm1, %v1998_v32  ;;  %429 = vst.msk [vmem:[#allocation13 + $0x7] sm:$0x1] %vm417_vm1, %v1998_v32  ;;  %1408 = vmatmul.mubr.msk.f32.vlgmr.msra.gmra.mrb[2].mxu1 %vm295_vm2, %v1998_v32 }
 0x2ca   :  { %1489 = vmatpush1.bf16.msra.mxu1 %v1939_v19  ;;  %768 = vmatprep.mubr.f32.mxu1 %v1818_v0 }
 0x2cb   :  { %1491 = vmatprep.subr.bf16.mxu1 %v1943_v26 }
 0x2ce   :  { %1493 = vmatpush1.bf16.msra.mxu1 %v1945_v30 }
 0x2cf   :  { %1495 = vmatprep.subr.bf16.mxu1 %v1948_v40 }
 0x2d2   :  { %1497 = vmatpush1.bf16.msra.mxu1 %v1951_v44 }
 0x2d3   :  { %1499 = vmatprep.subr.bf16.mxu1 %v1954_v47 }
 0x2d6   :  { %1501 = vmatpush1.bf16.msra.mxu1 %v1959_v51 }
 0x2d7   :  { %1519 = vmatprep.subr.bf16.mxu1 %v1937_v15 }
 0x39c   :  { %v502_v33 = vpop.f32.mrb[2].mxu1 }
 0x39d   :  { %v504_v34 = vpop.f32.mrb[3].mxu1 }
 0x39e   :  { %v509_v35 = vcombine.low %v502_v33, %v504_v34 }
 0x3a0   :  { %v516_v36 = vrot.slane %v509_v35, %v1991_v4 }
 0x3a2   :  { %v523_v37 = vrot.slane %v516_v36, %v1991_v4 }
 0x3a4   :  { %v525_v39 = vadd.f32 %v523_v37, %v433_v38 }
 0x3a6   :  { %533 = vrot.lane.b32.xlu1 %v525_v39, %s1820_s5  ;;  %v1409_v41 = vmul.f32 -1.442695, %v525_v39 }
 0x3a8   :  { %1591 = vpow2.f32 %v1409_v41 }
 0x3b2   :  { %v1592_v42 = vpop.eup %1591 }
 0x3b3   :  { %v529_v43 = vadd.f32 1.0, %v1592_v42 }
 0x3b5   :  { %1593 = vrcp.f32 %v529_v43 }
 0x3bf   :  { %v1594_v48 = vpop.eup %1593 }
 0x3c0   :  { %v538_v52 = vmul.f32 %v1594_v48, %v407_v27  ;;  %v547_v56 = vrot.slane %v1594_v48, 1 }
 0x418   :  { %v534_v45 = vpop.permute.xlu1 %533 }
 0x419   :  { %v535_v46 = vrot.slane %v534_v45, 1 }
 0x41b   :  { %1595 = vtanh.f32 %v535_v46 }
 0x425   :  { %v1596_v49 = vpop.eup %1595 }
 0x426   :  { %v539_v50 = vmul.f32 %v1596_v49, %v1594_v48 }
 0x428   :  { %541 = vrot.lane.b32.xlu0 %v539_v50, %s1820_s5 }
 0x49a   :  { %v542_v53 = vpop.permute.xlu0 %541 }
 0x49b   :  { %v544_v54 = vadd.f32 %v542_v53, %v538_v52 }
 0x49d   :  { %1597 = vtanh.f32 %v544_v54 }
 0x4a7   :  { %v1598_v55 = vpop.eup %1597 }
 0x4a8   :  { %550 = vrot.lane.b32.xlu1 %v1598_v55, %s1820_s5  ;;  %v835_v55 = vld [vmem:[#allocation2 + $0x4] ss:$8 sm:$0x3] }
 0x51a   :  { %v551_v57 = vpop.permute.xlu1 %550 }
 0x51b   :  { %v2020_v58 = vmul.f32 %v551_v57, %v547_v56 }
 0x51d   :  { %554 = vst.msk [vmem:[#allocation12 + $0x1] sm:$0x1] %vm417_vm1, %v2020_v58  ;;  %564 = vst.msk [vmem:[#allocation13 + $0x6] sm:$0x1] %vm417_vm1, %v2020_v58  ;;  %1410 = vmatmul.mubr.msk.f32.vlgmr.msra.gmra.mrb[2].mxu0 %vm295_vm2, %v2020_v58 }
 0x51e   :  { %1505 = vmatpush1.bf16.msra.mxu0 %v1939_v19  ;;  %902 = vmatprep.mubr.f32.mxu0 %v1818_v0 }
 0x51f   :  { %1507 = vmatprep.subr.bf16.mxu0 %v1943_v26 }
 0x522   :  { %1509 = vmatpush1.bf16.msra.mxu0 %v1945_v30 }
 0x523   :  { %1511 = vmatprep.subr.bf16.mxu0 %v1948_v40 }
 0x526   :  { %1513 = vmatpush1.bf16.msra.mxu0 %v1951_v44 }
 0x527   :  { %1515 = vmatprep.subr.bf16.mxu0 %v1954_v47 }
 0x52a   :  { %1517 = vmatpush1.bf16.msra.mxu0 %v1959_v51 }
 0x52b   :  { %1535 = vmatprep.subr.bf16.mxu0 %v1937_v15 }
 0x5f0   :  { %v636_v60 = vpop.f32.mrb[2].mxu0 }
 0x5f1   :  { %v638_v61 = vpop.f32.mrb[3].mxu0 }
 0x5f2   :  { %v643_v62 = vcombine.low %v636_v60, %v638_v61 }
 0x5f4   :  { %v650_v63 = vrot.slane %v643_v62, %v1991_v4 }
 0x5f6   :  { %v657_v1 = vrot.slane %v650_v63, %v1991_v4 }
 0x5f8   :  { %v659_v3 = vadd.f32 %v657_v1, %v567_v2 }
 0x5fa   :  { %667 = vrot.lane.b32.xlu0 %v659_v3, %s1820_s5  ;;  %v1411_v5 = vmul.f32 -1.442695, %v659_v3 }
 0x5fc   :  { %1599 = vpow2.f32 %v1411_v5 }
 0x606   :  { %v1600_v6 = vpop.eup %1599 }
 0x607   :  { %v663_v7 = vadd.f32 1.0, %v1600_v6 }
 0x609   :  { %1601 = vrcp.f32 %v663_v7 }
 0x613   :  { %v1602_v10 = vpop.eup %1601 }
 0x614   :  { %v672_v13 = vmul.f32 %v1602_v10, %v544_v54  ;;  %v681_v18 = vrot.slane %v1602_v10, 1 }
 0x66c   :  { %v668_v8 = vpop.permute.xlu0 %667 }
 0x66d   :  { %v669_v9 = vrot.slane %v668_v8, 1 }
 0x66f   :  { %1603 = vtanh.f32 %v669_v9 }
 0x679   :  { %v1604_v11 = vpop.eup %1603 }
 0x67a   :  { %v673_v12 = vmul.f32 %v1604_v11, %v1602_v10 }
 0x67c   :  { %675 = vrot.lane.b32.xlu1 %v673_v12, %s1820_s5 }
 0x6ee   :  { %v676_v14 = vpop.permute.xlu1 %675 }
 0x6ef   :  { %v678_v16 = vadd.f32 %v676_v14, %v672_v13 }
 0x6f1   :  { %1605 = vtanh.f32 %v678_v16 }
 0x6fb   :  { %v1606_v17 = vpop.eup %1605 }
 0x6fc   :  { %684 = vrot.lane.b32.xlu0 %v1606_v17, %s1820_s5 }
 0x76e   :  { %v685_v20 = vpop.permute.xlu0 %684 }
 0x76f   :  { %v2042_v21 = vmul.f32 %v685_v20, %v681_v18 }
 0x771   :  { %688 = vst.msk [vmem:[#allocation12 + $0x2] sm:$0x1] %vm417_vm1, %v2042_v21  ;;  %698 = vst.msk [vmem:[#allocation13 + $0x5] sm:$0x1] %vm417_vm1, %v2042_v21  ;;  %1412 = vmatmul.mubr.msk.f32.vlgmr.msra.gmra.mrb[4].mxu1 %vm295_vm2, %v2042_v21 }
 0x772   :  { %1521 = vmatpush1.bf16.msra.mxu1 %v1939_v19  ;;  %1036 = vmatprep.mubr.f32.mxu1 %v1818_v0 }
 0x773   :  { %1523 = vmatprep.subr.bf16.mxu1 %v1943_v26 }
 0x776   :  { %1525 = vmatpush1.bf16.msra.mxu1 %v1945_v30 }
 0x777   :  { %1527 = vmatprep.subr.bf16.mxu1 %v1948_v40 }
 0x77a   :  { %1529 = vmatpush1.bf16.msra.mxu1 %v1951_v44 }
 0x77b   :  { %1531 = vmatprep.subr.bf16.mxu1 %v1954_v47 }
 0x77e   :  { %1533 = vmatpush1.bf16.msra.mxu1 %v1959_v51 }
 0x77f   :  { %1551 = vmatprep.subr.bf16.mxu1 %v1937_v15 }
 0x844   :  { %v770_v22 = vpop.f32.mrb[4].mxu1 }
 0x845   :  { %v772_v23 = vpop.f32.mrb[5].mxu1 }
 0x846   :  { %v777_v24 = vcombine.low %v770_v22, %v772_v23 }
 0x848   :  { %v784_v25 = vrot.slane %v777_v24, %v1991_v4 }
 0x84a   :  { %v791_v27 = vrot.slane %v784_v25, %v1991_v4 }
 0x84c   :  { %v793_v29 = vadd.f32 %v791_v27, %v701_v28 }
 0x84e   :  { %801 = vrot.lane.b32.xlu1 %v793_v29, %s1820_s5  ;;  %v1413_v31 = vmul.f32 -1.442695, %v793_v29 }
 0x850   :  { %1607 = vpow2.f32 %v1413_v31 }
 0x85a   :  { %v1608_v33 = vpop.eup %1607 }
 0x85b   :  { %v797_v34 = vadd.f32 1.0, %v1608_v33 }
 0x85d   :  { %1609 = vrcp.f32 %v797_v34 }
 0x867   :  { %v1610_v15 = vpop.eup %1609 }
 0x868   :  { %v806_v39 = vmul.f32 %v1610_v15, %v678_v16  ;;  %v815_v45 = vrot.slane %v1610_v15, 1 }
 0x8c0   :  { %v802_v35 = vpop.permute.xlu1 %801 }
 0x8c1   :  { %v803_v36 = vrot.slane %v802_v35, 1 }
 0x8c3   :  { %1611 = vtanh.f32 %v803_v36 }
 0x8cd   :  { %v1612_v37 = vpop.eup %1611 }
 0x8ce   :  { %v807_v38 = vmul.f32 %v1612_v37, %v1610_v15  ;;  %v1103_v15 = vld [vmem:[#allocation2 + $0x6] ss:$8 sm:$0x3] }
 0x8d0   :  { %809 = vrot.lane.b32.xlu0 %v807_v38, %s1820_s5 }
 0x942   :  { %v810_v41 = vpop.permute.xlu0 %809 }
 0x943   :  { %v812_v42 = vadd.f32 %v810_v41, %v806_v39 }
 0x945   :  { %1613 = vtanh.f32 %v812_v42 }
 0x94f   :  { %v1614_v43 = vpop.eup %1613 }
 0x950   :  { %818 = vrot.lane.b32.xlu1 %v1614_v43, %s1820_s5 }
 0x9c2   :  { %v819_v46 = vpop.permute.xlu1 %818 }
 0x9c3   :  { %v2064_v48 = vmul.f32 %v819_v46, %v815_v45 }
 0x9c5   :  { %822 = vst.msk [vmem:[#allocation12 + $0x3] sm:$0x1] %vm417_vm1, %v2064_v48  ;;  %832 = vst.msk [vmem:[#allocation13 + $0x4] sm:$0x1] %vm417_vm1, %v2064_v48  ;;  %1414 = vmatmul.mubr.msk.f32.vlgmr.msra.gmra.mrb[4].mxu0 %vm295_vm2, %v2064_v48 }
 0x9c6   :  { %1537 = vmatpush1.bf16.msra.mxu0 %v1939_v19  ;;  %1170 = vmatprep.mubr.f32.mxu0 %v1818_v0 }
 0x9c7   :  { %1539 = vmatprep.subr.bf16.mxu0 %v1943_v26 }
 0x9ca   :  { %1541 = vmatpush1.bf16.msra.mxu0 %v1945_v30 }
 0x9cb   :  { %1543 = vmatprep.subr.bf16.mxu0 %v1948_v40 }
 0x9ce   :  { %1545 = vmatpush1.bf16.msra.mxu0 %v1951_v44 }
 0x9cf   :  { %1547 = vmatprep.subr.bf16.mxu0 %v1954_v47 }
 0x9d2   :  { %1549 = vmatpush1.bf16.msra.mxu0 %v1959_v51 }
 0xa98   :  { %v904_v49 = vpop.f32.mrb[4].mxu0 }
 0xa99   :  { %v906_v50 = vpop.f32.mrb[5].mxu0 }
 0xa9a   :  { %v911_v52 = vcombine.low %v904_v49, %v906_v50 }
 0xa9c   :  { %v918_v53 = vrot.slane %v911_v52, %v1991_v4 }
 0xa9e   :  { %v925_v54 = vrot.slane %v918_v53, %v1991_v4 }
 0xaa0   :  { %v927_v56 = vadd.f32 %v925_v54, %v835_v55 }
 0xaa2   :  { %935 = vrot.lane.b32.xlu0 %v927_v56, %s1820_s5  ;;  %v1415_v57 = vmul.f32 -1.442695, %v927_v56 }
 0xaa4   :  { %1615 = vpow2.f32 %v1415_v57 }
 0xaae   :  { %v1616_v60 = vpop.eup %1615 }
 0xaaf   :  { %v931_v61 = vadd.f32 1.0, %v1616_v60 }
 0xab1   :  { %1617 = vrcp.f32 %v931_v61 }
 0xabb   :  { %v1618_v1 = vpop.eup %1617 }
 0xabc   :  { %v940_v5 = vmul.f32 %v1618_v1, %v812_v42  ;;  %v949_v9 = vrot.slane %v1618_v1, 1 }
 0xb14   :  { %v936_v62 = vpop.permute.xlu0 %935 }
 0xb15   :  { %v937_v63 = vrot.slane %v936_v62, 1 }
 0xb17   :  { %1619 = vtanh.f32 %v937_v63 }
 0xb21   :  { %v1620_v2 = vpop.eup %1619 }
 0xb22   :  { %v941_v3 = vmul.f32 %v1620_v2, %v1618_v1  ;;  %v1237_v2 = vld [vmem:[#allocation2 + $0x7] ss:$8 sm:$0x3] }
 0xb24   :  { %943 = vrot.lane.b32.xlu1 %v941_v3, %s1820_s5 }
 0xb96   :  { %v944_v6 = vpop.permute.xlu1 %943 }
 0xb97   :  { %v946_v7 = vadd.f32 %v944_v6, %v940_v5 }
 0xb99   :  { %1621 = vtanh.f32 %v946_v7 }
 0xba3   :  { %v1622_v8 = vpop.eup %1621 }
 0xba4   :  { %952 = vrot.lane.b32.xlu0 %v1622_v8, %s1820_s5 }
 0xc16   :  { %v953_v10 = vpop.permute.xlu0 %952 }
 0xc17   :  { %v2085_v11 = vmul.f32 %v953_v10, %v949_v9 }
 0xc19   :  { %956 = vst.msk [vmem:[#allocation12 + $0x4] sm:$0x1] %vm417_vm1, %v2085_v11  ;;  %966 = vst.msk [vmem:[#allocation13 + $0x3] sm:$0x1] %vm417_vm1, %v2085_v11  ;;  %1416 = vmatmul.mubr.msk.f32.vlgmr.msra.gmra.mrb[6].mxu1 %vm295_vm2, %v2085_v11 }
 0xc1a   :  { %1553 = vmatpush1.bf16.msra.mxu1 %v1939_v19  ;;  %1304 = vmatprep.mubr.f32.mxu1 %v1818_v0  ;;  %v969_v0 = vld [vmem:[#allocation2 + $0x5] ss:$8 sm:$0x3] }
 0xc1b   :  { %1555 = vmatprep.subr.bf16.mxu1 %v1943_v26 }
 0xc1e   :  { %1557 = vmatpush1.bf16.msra.mxu1 %v1945_v30 }
 0xc1f   :  { %1559 = vmatprep.subr.bf16.mxu1 %v1948_v40 }
 0xc22   :  { %1561 = vmatpush1.bf16.msra.mxu1 %v1951_v44 }
 0xc23   :  { %1563 = vmatprep.subr.bf16.mxu1 %v1954_v47 }
 0xc26   :  { %1565 = vmatpush1.bf16.msra.mxu1 %v1959_v51 }
 0xcec   :  { %v1038_v12 = vpop.f32.mrb[6].mxu1 }
 0xced   :  { %v1040_v13 = vpop.f32.mrb[7].mxu1 }
 0xcee   :  { %v1045_v14 = vcombine.low %v1038_v12, %v1040_v13 }
 0xcf0   :  { %v1052_v16 = vrot.slane %v1045_v14, %v1991_v4  ;;  %v693_v14 = vrot.slane %v2042_v21, %v1985_v59 }
 0xcf2   :  { %v1059_v19 = vrot.slane %v1052_v16, %v1991_v4  ;;  %v961_v16 = vrot.slane %v2085_v11, %v1985_v59 }
 0xcf4   :  { %v1061_v17 = vadd.f32 %v1059_v19, %v969_v0 }
 0xcf6   :  { %1069 = vrot.lane.b32.xlu1 %v1061_v17, %s1820_s5  ;;  %v1417_v26 = vmul.f32 -1.442695, %v1061_v17 }
 0xcf8   :  { %1623 = vpow2.f32 %v1417_v26 }
 0xd02   :  { %v1624_v30 = vpop.eup %1623 }
 0xd03   :  { %v1065_v40 = vadd.f32 1.0, %v1624_v30 }
 0xd05   :  { %1625 = vrcp.f32 %v1065_v40 }
 0xd0f   :  { %v1626_v47 = vpop.eup %1625 }
 0xd10   :  { %v1074_v22 = vmul.f32 %v1626_v47, %v946_v7  ;;  %v1083_v27 = vrot.slane %v1626_v47, 1 }
 0xd68   :  { %v1070_v44 = vpop.permute.xlu1 %1069 }
 0xd69   :  { %v1071_v18 = vrot.slane %v1070_v44, 1  ;;  %v559_v44 = vrot.slane %v2020_v58, %v1985_v59 }
 0xd6b   :  { %1627 = vtanh.f32 %v1071_v18  ;;  %v827_v18 = vrot.slane %v2064_v48, %v1985_v59 }
 0xd75   :  { %v1628_v51 = vpop.eup %1627 }
 0xd76   :  { %v1075_v20 = vmul.f32 %v1628_v51, %v1626_v47 }
 0xd78   :  { %1077 = vrot.lane.b32.xlu0 %v1075_v20, %s1820_s5 }
 0xdea   :  { %v1078_v23 = vpop.permute.xlu0 %1077 }
 0xdeb   :  { %v1080_v24 = vadd.f32 %v1078_v23, %v1074_v22 }
 0xded   :  { %1629 = vtanh.f32 %v1080_v24 }
 0xdf7   :  { %v1630_v25 = vpop.eup %1629 }
 0xdf8   :  { %1086 = vrot.lane.b32.xlu1 %v1630_v25, %s1820_s5 }
 0xe6a   :  { %v1087_v28 = vpop.permute.xlu1 %1086 }
 0xe6b   :  { %v2106_v29 = vmul.f32 %v1087_v28, %v1083_v27 }
 0xe6d   :  { %1090 = vst.msk [vmem:[#allocation12 + $0x5] sm:$0x1] %vm417_vm1, %v2106_v29  ;;  %1100 = vst.msk [vmem:[#allocation13 + $0x2] sm:$0x1] %vm417_vm1, %v2106_v29  ;;  %1418 = vmatmul.mubr.msk.f32.vlgmr.msra.gmra.mrb[6].mxu0 %vm295_vm2, %v2106_v29  ;;  %v1095_v47 = vrot.slane %v2106_v29, %v1985_v59 }
 0xf40   :  { %v1172_v31 = vpop.f32.mrb[6].mxu0 }
 0xf41   :  { %v1174_v33 = vpop.f32.mrb[7].mxu0 }
 0xf42   :  { %v1179_v34 = vcombine.low %v1172_v31, %v1174_v33 }
 0xf44   :  { %v1186_v35 = vrot.slane %v1179_v34, %v1991_v4 }
 0xf46   :  { %v1193_v36 = vrot.slane %v1186_v35, %v1991_v4 }
 0xf48   :  { %v1195_v37 = vadd.f32 %v1193_v36, %v1103_v15 }
 0xf4a   :  { %1203 = vrot.lane.b32.xlu0 %v1195_v37, %s1820_s5  ;;  %v1419_v38 = vmul.f32 -1.442695, %v1195_v37 }
 0xf4c   :  { %1631 = vpow2.f32 %v1419_v38 }
 0xf56   :  { %v1632_v39 = vpop.eup %1631 }
 0xf57   :  { %v1199_v41 = vadd.f32 1.0, %v1632_v39 }
 0xf59   :  { %1633 = vrcp.f32 %v1199_v41 }
 0xf63   :  { %v1634_v45 = vpop.eup %1633 }
 0xf64   :  { %v1208_v50 = vmul.f32 %v1634_v45, %v1080_v24  ;;  %v1217_v55 = vrot.slane %v1634_v45, 1 }
 0xfbc   :  { %v1204_v42 = vpop.permute.xlu0 %1203 }
 0xfbd   :  { %v1205_v43 = vrot.slane %v1204_v42, 1 }
 0xfbf   :  { %1635 = vtanh.f32 %v1205_v43 }
 0xfc9   :  { %v1636_v46 = vpop.eup %1635 }
 0xfca   :  { %v1209_v49 = vmul.f32 %v1636_v46, %v1634_v45 }
 0xfcc   :  { %1211 = vrot.lane.b32.xlu1 %v1209_v49, %s1820_s5 }
0x103e   :  { %v1212_v52 = vpop.permute.xlu1 %1211 }
0x103f   :  { %v1214_v53 = vadd.f32 %v1212_v52, %v1208_v50 }
0x1041   :  { %1637 = vtanh.f32 %v1214_v53 }
0x104b   :  { %v1638_v54 = vpop.eup %1637 }
0x104c   :  { %1220 = vrot.lane.b32.xlu0 %v1638_v54, %s1820_s5 }
0x10be   :  { %v1221_v56 = vpop.permute.xlu0 %1220 }
0x10bf   :  { %v1223_v57 = vmul.f32 %v1221_v56, %v1217_v55 }
0x10c1   :  { %1224 = vst.msk [vmem:[#allocation12 + $0x6] sm:$0x1] %vm417_vm1, %v1223_v57  ;;  %1234 = vst.msk [vmem:[#allocation13 + $0x1] sm:$0x1] %vm417_vm1, %v1223_v57  ;;  %1420 = vmatmul.mubr.msk.f32.vlgmr.msra.gmra.mrb[8].mxu1 %vm295_vm2, %v1223_v57  ;;  %v1229_v19 = vrot.slane %v1223_v57, %v1985_v59 }
0x1194   :  { %v1306_v60 = vpop.f32.mrb[8].mxu1 }
0x1195   :  { %v1308_v61 = vpop.f32.mrb[9].mxu1 }
0x1196   :  { %v1313_v62 = vcombine.low %v1306_v60, %v1308_v61 }
0x1198   :  { %v1320_v63 = vrot.slane %v1313_v62, %v1991_v4 }
0x119a   :  { %v1327_v1 = vrot.slane %v1320_v63, %v1991_v4  ;;  %v423_v4 = vrot.slane %v1998_v32, %v1985_v59 }
0x119c   :  { %v1329_v3 = vadd.f32 %v1327_v1, %v1237_v2 }
0x119e   :  { %1337 = vrot.lane.b32.xlu1 %v1329_v3, %s1820_s5  ;;  %v1421_v5 = vmul.f32 -1.442695, %v1329_v3 }
0x11a0   :  { %1639 = vpow2.f32 %v1421_v5 }
0x11aa   :  { %v1640_v6 = vpop.eup %1639 }
0x11ab   :  { %v1333_v7 = vadd.f32 1.0, %v1640_v6 }
0x11ad   :  { %1641 = vrcp.f32 %v1333_v7 }
0x11b7   :  { %v1642_v10 = vpop.eup %1641 }
0x11b8   :  { %v1342_v0 = vmul.f32 %v1642_v10, %v1214_v53  ;;  %v1351_v51 = vrot.slane %v1642_v10, 1 }
0x1210   :  { %v1338_v8 = vpop.permute.xlu1 %1337 }
0x1211   :  { %v1339_v9 = vrot.slane %v1338_v8, 1 }
0x1213   :  { %1643 = vtanh.f32 %v1339_v9 }
0x121d   :  { %v1644_v12 = vpop.eup %1643 }
0x121e   :  { %v1343_v13 = vmul.f32 %v1644_v12, %v1642_v10 }
0x1220   :  { %1345 = vrot.lane.b32.xlu0 %v1343_v13, %s1820_s5 }
0x1224   :  { %424 = vrot.lane.b32.xlu0 %v423_v4, %s1821_s25 }
0x1228   :  { %694 = vrot.lane.b32.xlu0 %v693_v14, %s1821_s25 }
0x122c   :  { %962 = vrot.lane.b32.xlu0 %v961_v16, %s1821_s25 }
0x1230   :  { %1230 = vrot.lane.b32.xlu0 %v1229_v19, %s1821_s25 }
0x1292   :  { %v1346_v17 = vpop.permute.xlu0 %1345 }
0x1293   :  { %v1348_v32 = vadd.f32 %v1346_v17, %v1342_v0 }
0x1295   :  { %1645 = vtanh.f32 %v1348_v32 }
0x1296   :  { %v425_v26 = vpop.permute.xlu0 %424 }
0x1297   :  { %428 = vst.msk [vmem:[#allocation12 + $0xf] sm:$0x1] %vm417_vm1, %v425_v26  ;;  %431 = vst.msk [vmem:[#allocation13 + $0x8] sm:$0x1] %vm417_vm1, %v425_v26 }
0x129a   :  { %v695_v21 = vpop.permute.xlu0 %694 }
0x129b   :  { %697 = vst.msk [vmem:[#allocation12 + $0xd] sm:$0x1] %vm417_vm1, %v695_v21  ;;  %699 = vst.msk [vmem:[#allocation13 + $0xa] sm:$0x1] %vm417_vm1, %v695_v21 }
0x129e   :  { %v963_v11 = vpop.permute.xlu0 %962 }
0x129f   :  { %v1646_v30 = vpop.eup %1645  ;;  %965 = vst.msk [vmem:[#allocation12 + $0xb] sm:$0x1] %vm417_vm1, %v963_v11  ;;  %967 = vst.msk [vmem:[#allocation13 + $0xc] sm:$0x1] %vm417_vm1, %v963_v11 }
0x12a0   :  { %1354 = vrot.lane.b32.xlu1 %v1646_v30, %s1820_s5 }
0x12a2   :  { %v1231_v40 = vpop.permute.xlu0 %1230 }
0x12a3   :  { %1233 = vst.msk [vmem:[#allocation12 + $0x9] sm:$0x1] %vm417_vm1, %v1231_v40  ;;  %1235 = vst.msk [vmem:[#allocation13 + $0xe] sm:$0x1] %vm417_vm1, %v1231_v40 }
0x12a4   :  { %560 = vrot.lane.b32.xlu1 %v559_v44, %s1821_s25 }
0x12a8   :  { %828 = vrot.lane.b32.xlu1 %v827_v18, %s1821_s25 }
0x12ac   :  { %1096 = vrot.lane.b32.xlu1 %v1095_v47, %s1821_s25 }
0x1312   :  { %v1355_v20 = vpop.permute.xlu1 %1354 }
0x1313   :  { %v1357_v22 = vmul.f32 %v1355_v20, %v1351_v51 }
0x1315   :  { %1358 = vst.msk [vmem:[#allocation12 + $0x7] sm:$0x1] %vm417_vm1, %v1357_v22  ;;  %1368 = vst.msk [vmem:[#allocation13] sm:$0x1] %vm417_vm1, %v1357_v22  ;;  %v1363_v58 = vrot.slane %v1357_v22, %v1985_v59 }
0x1316   :  { %v561_v23 = vpop.permute.xlu1 %560 }
0x1317   :  { %563 = vst.msk [vmem:[#allocation12 + $0xe] sm:$0x1] %vm417_vm1, %v561_v23  ;;  %565 = vst.msk [vmem:[#allocation13 + $0x9] sm:$0x1] %vm417_vm1, %v561_v23  ;;  %1364 = vrot.lane.b32.xlu1 %v1363_v58, %s1821_s25 }
0x131a   :  { %v829_v48 = vpop.permute.xlu1 %828 }
0x131b   :  { %831 = vst.msk [vmem:[#allocation12 + $0xc] sm:$0x1] %vm417_vm1, %v829_v48  ;;  %833 = vst.msk [vmem:[#allocation13 + $0xb] sm:$0x1] %vm417_vm1, %v829_v48 }
0x131e   :  { %v1097_v24 = vpop.permute.xlu1 %1096 }
0x131f   :  { %1099 = vst.msk [vmem:[#allocation12 + $0xa] sm:$0x1] %vm417_vm1, %v1097_v24  ;;  %1101 = vst.msk [vmem:[#allocation13 + $0xd] sm:$0x1] %vm417_vm1, %v1097_v24 }
0x1389   :  { %v1365_v59 = vpop.permute.xlu1 %1364 }
0x138a   :  { %1367 = vst.msk [vmem:[#allocation12 + $0x8] sm:$0x1] %vm417_vm1, %v1365_v59  ;;  %1369 = vst.msk [vmem:[#allocation13 + $0xf] sm:$0x1] %vm417_vm1, %v1365_v59 }
0x138b   :  { %1768 = shalt.err (!%p1765_p2)
}
0x138c   :  { %s1769_s21 = scalar_lea.hbm %s2204_s6, 256 }
0x138d   :  { %p1770_p3 = scmp.ne.s32.totalorder %s2204_s6, %s1769_s21  ;;  %p1773_p4 = scmp.lt.u32.totalorder %s1769_s21, %s2204_s6 }
0x138f   :  { %p1775_p5 = pnand %p1773_p4, %p1770_p3 }
0x1391   :  { %1778 = shalt.err (!%p1775_p5)
}
0x1392   :  { %s1824_s0 = smov 128   ;;  %s1825_s16 = smov 8  }
0x1393   :  { %1381 = dma.vmem_to_hbm [thread:$0]  %s1376_s14, 256, %s2204_s6, [#allocation5], %s1824_s0, %s1824_s0, %s1825_s16  }
0x1394   :  { %s1779_s29 = scalar_lea.vmem %s2165_s17, 256  ;;  %p1784_p7 = scmp.lt.s32.totalorder %s2165_s17, %s2165_s17 }
0x1395   :  { %p1780_p6 = scmp.ne.s32.totalorder %s2165_s17, %s1779_s29  ;;  %p1785_p8 = scmp.lt.s32.totalorder %s1779_s29, %s1779_s29 }
0x1397   :  { %p1786_p9 = por %p1785_p8, %p1784_p7 }
0x1399   :  { %p1787_p10 = pnand %p1786_p9, %p1780_p6 }
0x139b   :  { %1790 = shalt.err (!%p1787_p10)
}
0x139c   :  { %s1791_s9 = scalar_lea.hbm %s2205_s7, 256 }
0x139d   :  { %p1792_p11 = scmp.ne.s32.totalorder %s2205_s7, %s1791_s9  ;;  %p1795_p12 = scmp.lt.u32.totalorder %s1791_s9, %s2205_s7 }
0x139f   :  { %p1797_p13 = pnand %p1795_p12, %p1792_p11 }
0x13a1   :  { %1800 = shalt.err (!%p1797_p13)
}
0x13a2   :  { %1393 = dma.vmem_to_hbm [thread:$0]  %s2165_s17, 256, %s2205_s7, [#allocation14], %s1824_s0, %s1824_s0, %s1825_s16  }
0x13a3   :  { %1807 = dma.done.wait [#allocation5], 256  }
0x13a4   :  { %1808 = vsyncadd [#allocation5], 4294967040 }
0x13a5   :  { %1809 = dma.done.wait [#allocation14], 256  }
0x13a6   :  { %1810 = vsyncadd [#allocation14], 4294967040 }
0x13a7   :  { %1400 = vsyncpa [#allocation4], 1 }
0x13a8   :  { %1401 = vsyncpa [#allocation7], 1 }
0x13a9   :  { %1402 = vsyncpa [#allocation10], 1 }
0x13aa   :  { %1403 = vsyncpa [#allocation5], 1 }
0x13ab   :  { %1404 = vsyncpa [#allocation14], 1 }

</bundles_post_ra>
